<compile_context>
chip_gen: v5e
topology: v5e:2x2
jax: 0.10.0
libtpu: 0.0.40
codegen_flags: <defaults>
</compile_context>

<pallas_src>
import functools
import numpy as np
import jax
import jax.numpy as jnp
from jax.experimental import pallas as pl
from jax.experimental.pallas import tpu as pltpu

LN_EPS = 1e-5              # RoBERTa layer-norm epsilon
NEG_INF = -1e9             # additive mask value (matches naive softmax masking)
VMEM_LIMIT = 48 * 1024 * 1024   # safe on v5e/v6e (128 MiB) and v7x (64 MiB)


# ----------------------------- tiling helper -----------------------------

def _pick_tile(dim, target, aligns=(8,)):
    """Largest tile <= target that divides `dim` and is a multiple of one of
    `aligns` (tried in order); falls back to the full dim for small shapes."""
    if dim <= target:
        return dim
    for align in aligns:
        t = (target // align) * align
        while t >= align:
            if dim % t == 0:
                return t
            t -= align
    return dim


# ----------------------------- Pallas kernels -----------------------------

def _dense_kernel(x_ref, w_ref, b_ref, o_ref, *, activation):
    """Row-tiled matmul; full bf16 weight resident in VMEM, f32 accumulation,
    bias (+GELU) epilogue."""
    y = jnp.dot(x_ref[...], w_ref[...], preferred_element_type=jnp.float32)
    y = y + b_ref[...].astype(jnp.float32)
    if activation == 'gelu':
        # TODO(synk): HF BERT/RoBERTa uses exact erf-GELU; tanh approximation here.
        y = jax.nn.gelu(y, approximate=True)
    o_ref[...] = y.astype(o_ref.dtype)


def _dense_add_ln_kernel(x_ref, w_ref, b_ref, r_ref, g_ref, beta_ref, o_ref):
    """Row-tiled matmul with fused bias + residual-add + LayerNorm epilogue."""
    h = jnp.dot(x_ref[...], w_ref[...], preferred_element_type=jnp.float32)
    h = h + b_ref[...].astype(jnp.float32) + r_ref[...].astype(jnp.float32)
    mu = jnp.mean(h, axis=-1, keepdims=True)
    var = jnp.mean(jnp.square(h - mu), axis=-1, keepdims=True)
    y = (h - mu) * jax.lax.rsqrt(var + LN_EPS)
    o_ref[...] = (y * g_ref[...].astype(jnp.float32)
                  + beta_ref[...].astype(jnp.float32)).astype(o_ref.dtype)


def _layernorm_kernel(x_ref, g_ref, b_ref, o_ref):
    """Plain LayerNorm (embedding LN) — bf16 in, f32 math, bf16 out."""
    h = x_ref[...].astype(jnp.float32)
    mu = jnp.mean(h, axis=-1, keepdims=True)
    var = jnp.mean(jnp.square(h - mu), axis=-1, keepdims=True)
    o_ref[...] = ((h - mu) * jax.lax.rsqrt(var + LN_EPS) * g_ref[...]
                  + b_ref[...]).astype(o_ref.dtype)


def _flash_attn_kernel(q_ref, k_ref, v_ref, bias_ref, o_ref, *scratch,
                       dh, hp, q_off, k_off, v_off, single_pass):
    """Attention over a fused-QKV layout.

    q_ref/k_ref/v_ref are column views of the (rows, 3*hidden) QKV matmul
    output; head h of this block lives at lane offset {q,k,v}_off + h*dh.
    The (1, tkv) additive mask bias broadcasts over q rows and heads.
    1/sqrt(dh) is pre-folded into Wq."""
    bias = bias_ref[0]                                       # (1, tkv) f32

    def head_scores(h):
        q = q_ref[:, q_off + h * dh: q_off + (h + 1) * dh]   # (tq, dh)  bf16
        k = k_ref[:, k_off + h * dh: k_off + (h + 1) * dh]   # (tkv, dh) bf16
        v = v_ref[:, v_off + h * dh: v_off + (h + 1) * dh]   # (tkv, dh) bf16
        s = jnp.einsum('qd,kd->qk', q, k,
                       preferred_element_type=jnp.float32) + bias
        return s, v

    if single_pass:
        # Whole kv axis in one tile: stable softmax, no online bookkeeping,
        # one lane-dense store of all heads in this block.
        outs = []
        for h in range(hp):
            s, v = head_scores(h)
            m = jnp.max(s, axis=-1, keepdims=True)
            p = jnp.exp(s - m)
            l = jnp.sum(p, axis=-1, keepdims=True)
            o = jnp.dot(p.astype(v.dtype), v, preferred_element_type=jnp.float32)
            outs.append(o * pl.reciprocal(l, approx=True))
        out = outs[0] if hp == 1 else jnp.concatenate(outs, axis=-1)
        o_ref[...] = out.astype(o_ref.dtype)
        return

    m_sc, l_sc, acc_sc = scratch
    kv = pl.program_id(3)

    @pl.when(kv == 0)
    def _():
        m_sc[...] = jnp.full_like(m_sc, -jnp.inf)
        l_sc[...] = jnp.zeros_like(l_sc)
        acc_sc[...] = jnp.zeros_like(acc_sc)

    for h in range(hp):
        s, v = head_scores(h)
        m_prev = m_sc[h]                                     # (tq, 1)
        m_new = jnp.maximum(m_prev, jnp.max(s, axis=-1, keepdims=True))
        alpha = jnp.exp(m_prev - m_new)
        p = jnp.exp(s - m_new)
        l_sc[h] = alpha * l_sc[h] + jnp.sum(p, axis=-1, keepdims=True)
        acc_sc[h] = alpha * acc_sc[h] + jnp.dot(
            p.astype(v.dtype), v, preferred_element_type=jnp.float32)
        m_sc[h] = m_new

    @pl.when(kv == pl.num_programs(3) - 1)
    def _():
        outs = [acc_sc[h] * pl.reciprocal(l_sc[h], approx=True) for h in range(hp)]
        out = outs[0] if hp == 1 else jnp.concatenate(outs, axis=-1)
        o_ref[...] = out.astype(o_ref.dtype)


def _head_kernel(x_ref, w_ref, b_ref, o_ref):
    """CLS head: sigmoid(sum(x * w) + b) on the VPU (avoids an N=1 MXU matmul)."""
    x = x_ref[...].astype(jnp.float32)             # (B, H)
    w = w_ref[...].astype(jnp.float32)             # (1, H)
    logits = jnp.sum(x * w, axis=-1, keepdims=True) + b_ref[...]
    o_ref[...] = jax.nn.sigmoid(logits)


# ----------------------------- kernel wrappers -----------------------------

def dense(x, w, b, *, activation=None, tm_target=512):
    """y = act(x @ w + b); full bf16 weight resident in VMEM (constant index)."""
    M, K = x.shape
    N = w.shape[1]
    tm = _pick_tile(M, tm_target, (8,))
    return pl.pallas_call(
        functools.partial(_dense_kernel, activation=activation),
        grid=(M // tm,),
        in_specs=[pl.BlockSpec((tm, K), lambda i: (i, 0)),
                  pl.BlockSpec((K, N), lambda i: (0, 0)),     # weight: fetched once
                  pl.BlockSpec((1, N), lambda i: (0, 0))],
        out_specs=pl.BlockSpec((tm, N), lambda i: (i, 0)),
        out_shape=jax.ShapeDtypeStruct((M, N), jnp.bfloat16),
        compiler_params=pltpu.CompilerParams(
            dimension_semantics=("parallel",),
            vmem_limit_bytes=VMEM_LIMIT),
    )(x, w, b.reshape(1, N))


def dense_add_layernorm(x, w, b, residual, gamma, beta, *, tm_target=512):
    """LayerNorm(residual + x @ w + b) * gamma + beta, all fused."""
    M, K = x.shape
    N = w.shape[1]
    tm = _pick_tile(M, tm_target, (8,))
    return pl.pallas_call(
        _dense_add_ln_kernel,
        grid=(M // tm,),
        in_specs=[pl.BlockSpec((tm, K), lambda i: (i, 0)),
                  pl.BlockSpec((K, N), lambda i: (0, 0)),     # weight: fetched once
                  pl.BlockSpec((1, N), lambda i: (0, 0)),
                  pl.BlockSpec((tm, N), lambda i: (i, 0)),
                  pl.BlockSpec((1, N), lambda i: (0, 0)),
                  pl.BlockSpec((1, N), lambda i: (0, 0))],
        out_specs=pl.BlockSpec((tm, N), lambda i: (i, 0)),
        out_shape=jax.ShapeDtypeStruct((M, N), jnp.bfloat16),
        compiler_params=pltpu.CompilerParams(
            dimension_semantics=("parallel",),
            vmem_limit_bytes=VMEM_LIMIT),
    )(x, w, b.reshape(1, N), residual, gamma.reshape(1, N), beta.reshape(1, N))


def layernorm(x, gamma, beta, *, tm_target=512):
    M, H = x.shape
    tm = _pick_tile(M, tm_target, (8,))
    return pl.pallas_call(
        _layernorm_kernel,
        grid=(M // tm,),
        in_specs=[pl.BlockSpec((tm, H), lambda i: (i, 0)),
                  pl.BlockSpec((1, H), lambda i: (0, 0)),
                  pl.BlockSpec((1, H), lambda i: (0, 0))],
        out_specs=pl.BlockSpec((tm, H), lambda i: (i, 0)),
        out_shape=jax.ShapeDtypeStruct((M, H), jnp.bfloat16),
        compiler_params=pltpu.CompilerParams(
            dimension_semantics=("parallel",)),
    )(x, gamma.reshape(1, H), beta.reshape(1, H))


def flash_attention(qkv, bias, num_heads, seq_len, *, tq_target=256, tkv_target=512):
    """Multi-head attention reading Q/K/V directly from the fused (B*S, 3*hidden)
    QKV matmul result and writing the context in (B*S, hidden) layout."""
    M, W3 = qkv.shape
    hidden = W3 // 3
    S = seq_len
    B = M // S
    H = num_heads
    dh = hidden // H

    # Heads per block: smallest head group whose lane width is a multiple of 128
    # (lane-dense attention I/O, e.g. 2 heads at dh=64).  Fall back to full-width
    # qkv blocks (all heads + all of Q/K/V per row tile) when dh can't tile 128.
    hp = None
    for cand in range(1, H + 1):
        if H % cand == 0 and (cand * dh) % 128 == 0:
            hp = cand
            break
    if hp is not None:
        cw = hp * dh                       # column block width of each qkv view
        n_hg = H // hp
        q_off, k_off, v_off = 0, 0, 0
        q_col = lambda hg: hg
        k_col = lambda hg: n_hg + hg
        v_col = lambda hg: 2 * n_hg + hg
    else:
        hp = H
        cw = W3                            # full-width fallback (small models/tests)
        n_hg = 1
        q_off, k_off, v_off = 0, hidden, 2 * hidden
        q_col = k_col = v_col = (lambda hg: 0)

    tq = _pick_tile(S, tq_target, (8,))
    tkv = _pick_tile(S, tkv_target, (128,))
    qb, kb = S // tq, S // tkv
    single_pass = (kb == 1)

    kernel = functools.partial(
        _flash_attn_kernel, dh=dh, hp=hp,
        q_off=q_off, k_off=k_off, v_off=v_off, single_pass=single_pass)

    in_specs = [
        pl.BlockSpec((tq, cw), lambda b, hg, qi, kv: (b * qb + qi, q_col(hg))),
        pl.BlockSpec((tkv, cw), lambda b, hg, qi, kv: (b * kb + kv, k_col(hg))),
        pl.BlockSpec((tkv, cw), lambda b, hg, qi, kv: (b * kb + kv, v_col(hg))),
        pl.BlockSpec((1, 1, tkv), lambda b, hg, qi, kv: (b, 0, kv)),
    ]
    out_spec = pl.BlockSpec((tq, hp * dh),
                            lambda b, hg, qi, kv: (b * qb + qi, hg))
    scratch = [] if single_pass else [
        pltpu.VMEM((hp, tq, 1), jnp.float32),      # running max (per head)
        pltpu.VMEM((hp, tq, 1), jnp.float32),      # running sum
        pltpu.VMEM((hp, tq, dh), jnp.float32),     # running output accumulator
    ]
    return pl.pallas_call(
        kernel,
        grid=(B, n_hg, qb, kb),
        in_specs=in_specs,
        out_specs=out_spec,
        out_shape=jax.ShapeDtypeStruct((M, hidden), jnp.bfloat16),
        scratch_shapes=scratch,
        compiler_params=pltpu.CompilerParams(
            dimension_semantics=("parallel", "parallel", "parallel", "arbitrary")),
    )(qkv, qkv, qkv, bias)


def classifier_head(cls_emb, w, b):
    B, H = cls_emb.shape
    return pl.pallas_call(
        _head_kernel,
        grid=(1,),
        in_specs=[pl.BlockSpec((B, H), lambda i: (0, 0)),
                  pl.BlockSpec((1, H), lambda i: (0, 0)),
                  pl.BlockSpec((1, 1), lambda i: (0, 0))],
        out_specs=pl.BlockSpec((B, 1), lambda i: (0, 0)),
        out_shape=jax.ShapeDtypeStruct((B, 1), jnp.float32),
    )(cls_emb, w.reshape(1, H), b.reshape(1, 1))


# ----------------------------- model definition -----------------------------

def init_params(key, vocab, max_pos, hidden, inter, layers):
    def normal(k, shape, scale=0.02):
        return scale * jax.random.normal(k, shape, jnp.float32)

    keys = iter(jax.random.split(key, 16 + 16 * layers))
    params = {
        'word_emb': normal(next(keys), (vocab, hidden)),
        'pos_emb': normal(next(keys), (max_pos, hidden)),
        'type_emb': normal(next(keys), (2, hidden)),
        'emb_ln_g': jnp.ones((hidden,), jnp.float32),
        'emb_ln_b': jnp.zeros((hidden,), jnp.float32),
        'layers': [],
        'cls_w': normal(next(keys), (hidden, 1)),
        'cls_b': jnp.zeros((1,), jnp.float32),
    }
    for _ in range(layers):
        lp = {
            'wq': normal(next(keys), (hidden, hidden)), 'bq': jnp.zeros((hidden,), jnp.float32),
            'wk': normal(next(keys), (hidden, hidden)), 'bk': jnp.zeros((hidden,), jnp.float32),
            'wv': normal(next(keys), (hidden, hidden)), 'bv': jnp.zeros((hidden,), jnp.float32),
            'wo': normal(next(keys), (hidden, hidden)), 'bo': jnp.zeros((hidden,), jnp.float32),
            'ln1_g': jnp.ones((hidden,), jnp.float32), 'ln1_b': jnp.zeros((hidden,), jnp.float32),
            'wi': normal(next(keys), (hidden, inter)), 'bi': jnp.zeros((inter,), jnp.float32),
            'wf': normal(next(keys), (inter, hidden)), 'bf': jnp.zeros((hidden,), jnp.float32),
            'ln2_g': jnp.ones((hidden,), jnp.float32), 'ln2_b': jnp.zeros((hidden,), jnp.float32),
        }
        params['layers'].append(lp)
    return params


def prepare_params(params, num_heads):
    """One-time prep: fuse Q/K/V into one (hidden, 3*hidden) matmul, fold the
    1/sqrt(dh) score scale into Wq/bq, and cast matmul weights to bf16
    (f32 accumulation stays inside the kernels)."""
    hidden = params['word_emb'].shape[1]
    dh = hidden // num_heads
    scale = 1.0 / float(np.sqrt(dh))
    bf16 = jnp.bfloat16
    prepped = {k: params[k] for k in ('word_emb', 'pos_emb', 'type_emb',
                                      'emb_ln_g', 'emb_ln_b', 'cls_w', 'cls_b')}
    prepped['layers'] = []
    for lp in params['layers']:
        wqkv = jnp.concatenate([lp['wq'] * scale, lp['wk'], lp['wv']], axis=1)
        bqkv = jnp.concatenate([lp['bq'] * scale, lp['bk'], lp['bv']])
        prepped['layers'].append({
            'wqkv': wqkv.astype(bf16), 'bqkv': bqkv.astype(jnp.float32),
            'wo': lp['wo'].astype(bf16), 'bo': lp['bo'],
            'ln1_g': lp['ln1_g'], 'ln1_b': lp['ln1_b'],
            'wi': lp['wi'].astype(bf16), 'bi': lp['bi'],
            'wf': lp['wf'].astype(bf16), 'bf': lp['bf'],
            'ln2_g': lp['ln2_g'], 'ln2_b': lp['ln2_b'],
        })
    return prepped


def bert_classifier_forward(params, input_ids, attention_mask, num_heads):
    B, S = input_ids.shape
    hidden = params['word_emb'].shape[1]

    # --- Embeddings. TODO(synk): table gathers stay in XLA (no clean BlockSpec
    # equivalent); the LayerNorm runs in a Pallas kernel on bf16 input. ---
    positions = jnp.arange(S)
    emb = (jnp.take(params['word_emb'], input_ids, axis=0)
           + params['pos_emb'][positions][None, :, :]
           + params['type_emb'][0][None, None, :])
    h = layernorm(emb.reshape(B * S, hidden).astype(jnp.bfloat16),
                  params['emb_ln_g'], params['emb_ln_b'])       # bf16 (B*S, hidden)

    # Additive attention-mask bias kept at (B, 1, S); broadcast inside the kernel.
    bias = ((1.0 - attention_mask.astype(jnp.float32)) * NEG_INF).reshape(B, 1, S)

    for lp in params['layers']:
        # Fused QKV projection (score scale already folded into Wq).
        qkv = dense(h, lp['wqkv'], lp['bqkv'])                  # (B*S, 3*hidden)
        # Attention reads Q/K/V column slices of `qkv` directly (no XLA
        # head-split/merge relayouts) and writes (B*S, hidden).
        ctx = flash_attention(qkv, bias, num_heads, S)
        # Output projection + residual + LayerNorm, fused in one kernel.
        h = dense_add_layernorm(ctx, lp['wo'], lp['bo'], h, lp['ln1_g'], lp['ln1_b'])
        # Feed-forward: up-projection+GELU, then down-projection fused with add+LN.
        inter = dense(h, lp['wi'], lp['bi'], activation='gelu')
        h = dense_add_layernorm(inter, lp['wf'], lp['bf'], h, lp['ln2_g'], lp['ln2_b'])

    # cls_embeddings = hidden_states[:, 0, :]  ->  sigmoid(linear(cls))
    cls_emb = h.reshape(B, S, hidden)[:, 0, :].astype(jnp.float32)
    return classifier_head(cls_emb, params['cls_w'], params['cls_b'])


# ----------------------------- main -----------------------------

if __name__ == "__main__":
    B, S = 2, 8
    VOCAB, MAX_POS, HIDDEN, HEADS, INTER, LAYERS = 100, 16, 32, 4, 64, 2

    root = jax.random.PRNGKey(0)
    k_params, k_ids = jax.random.split(root)

    params = init_params(k_params, VOCAB, MAX_POS, HIDDEN, INTER, LAYERS)
    params = prepare_params(params, HEADS)

    input_ids = jax.random.randint(k_ids, (B, S), 0, VOCAB, dtype=jnp.int32)
    attention_mask = jnp.array(
        [[1, 1, 1, 1, 1, 1, 1, 1],
         [1, 1, 1, 1, 1, 1, 0, 0]], dtype=jnp.int32)

    fwd = jax.jit(lambda p, ids, m: bert_classifier_forward(p, ids, m, HEADS))
    out = jax.block_until_ready(fwd(params, input_ids, attention_mask))
    assert out.shape == (B, 1)
    assert bool(jnp.all(jnp.isfinite(out)))
    print("KERNEL_OK")
</pallas_src>

<mosaic_0001>
module attributes {stable_mosaic.version = 11 : i64} {
  func.func @_dense_kernel(%arg0: i32, %arg1: memref<16x32xbf16, #tpu.memory_space<vmem>>, %arg2: memref<32x96xbf16, #tpu.memory_space<vmem>>, %arg3: memref<1x96xf32, #tpu.memory_space<vmem>>, %arg4: memref<16x96xbf16, #tpu.memory_space<vmem>>) attributes {dimension_semantics = [#tpu.dimension_semantics<parallel>], iteration_bounds = array<i64: 1>, scalar_prefetch = 0 : i64, scratch_operands = 0 : i64, tpu.core_type = #tpu.core_type<tc>, window_params = [{transform_indices = @transform_0, window_bounds = array<i64: 16, 32>}, {pipeline_mode = #tpu.pipeline_mode<synchronous>, transform_indices = @transform_1, window_bounds = array<i64: 32, 96>}, {pipeline_mode = #tpu.pipeline_mode<synchronous>, transform_indices = @transform_2, window_bounds = array<i64: 1, 96>}, {transform_indices = @transform_3, window_bounds = array<i64: 16, 96>}]} {
    %c0 = arith.constant 0 : index
    %c0_0 = arith.constant 0 : index
    %0 = vector.load %arg1[%c0, %c0_0] : memref<16x32xbf16, #tpu.memory_space<vmem>>, vector<16x32xbf16>
    %c0_1 = arith.constant 0 : index
    %c0_2 = arith.constant 0 : index
    %1 = vector.load %arg2[%c0_1, %c0_2] : memref<32x96xbf16, #tpu.memory_space<vmem>>, vector<32x96xbf16>
    %cst = arith.constant dense<0.000000e+00> : vector<16x96xf32>
    %2 = tpu.matmul %0, %1, %cst {dimension_numbers = #tpu.dot_dimension_numbers<[1], [0], [0], [1], [0, 0, 1, 1], [], []>} : vector<16x32xbf16>, vector<32x96xbf16>, vector<16x96xf32> -> vector<16x96xf32>
    %c0_3 = arith.constant 0 : index
    %c0_4 = arith.constant 0 : index
    %3 = vector.load %arg3[%c0_3, %c0_4] : memref<1x96xf32, #tpu.memory_space<vmem>>, vector<1x96xf32>
    %4 = vector.broadcast %3 : vector<1x96xf32> to vector<16x96xf32>
    %5 = arith.addf %2, %4 : vector<16x96xf32>
    %6 = arith.truncf %5 : vector<16x96xf32> to vector<16x96xbf16>
    %c0_5 = arith.constant 0 : index
    %c0_6 = arith.constant 0 : index
    %7 = vector.load %arg4[%c0_5, %c0_6] : memref<16x96xbf16, #tpu.memory_space<vmem>>, vector<16x96xbf16>
    tpu.vector_store %arg4[%c0_5, %c0_6], %6 {strides = array<i32>} : memref<16x96xbf16, #tpu.memory_space<vmem>>, vector<16x96xbf16>,
    return
  }
  func.func @transform_0(%arg0: i32) -> (i32, i32) {
    %c0_i32 = arith.constant 0 : i32
    %c0_i32_0 = arith.constant 0 : i32
    return %arg0, %c0_i32 : i32, i32
  }
  func.func @transform_1(%arg0: i32) -> (i32, i32) {
    %c0_i32 = arith.constant 0 : i32
    %c0_i32_0 = arith.constant 0 : i32
    %c0_i32_1 = arith.constant 0 : i32
    return %c0_i32, %c0_i32_0 : i32, i32
  }
  func.func @transform_2(%arg0: i32) -> (i32, i32) {
    %c0_i32 = arith.constant 0 : i32
    %c0_i32_0 = arith.constant 0 : i32
    %c0_i32_1 = arith.constant 0 : i32
    return %c0_i32, %c0_i32_0 : i32, i32
  }
  func.func @transform_3(%arg0: i32) -> (i32, i32) {
    %c0_i32 = arith.constant 0 : i32
    %c0_i32_0 = arith.constant 0 : i32
    return %arg0, %c0_i32 : i32, i32
  }
}

module attributes {stable_mosaic.version = 11 : i64} {
  func.func @_layernorm_kernel(%arg0: i32, %arg1: memref<16x32xbf16, #tpu.memory_space<vmem>>, %arg2: memref<1x32xf32, #tpu.memory_space<vmem>>, %arg3: memref<1x32xf32, #tpu.memory_space<vmem>>, %arg4: memref<16x32xbf16, #tpu.memory_space<vmem>>) attributes {dimension_semantics = [#tpu.dimension_semantics<parallel>], iteration_bounds = array<i64: 1>, scalar_prefetch = 0 : i64, scratch_operands = 0 : i64, tpu.core_type = #tpu.core_type<tc>, window_params = [{transform_indices = @transform_0, window_bounds = array<i64: 16, 32>}, {pipeline_mode = #tpu.pipeline_mode<synchronous>, transform_indices = @transform_1, window_bounds = array<i64: 1, 32>}, {pipeline_mode = #tpu.pipeline_mode<synchronous>, transform_indices = @transform_2, window_bounds = array<i64: 1, 32>}, {transform_indices = @transform_3, window_bounds = array<i64: 16, 32>}]} {
    %c0 = arith.constant 0 : index
    %c0_0 = arith.constant 0 : index
    %0 = vector.load %arg1[%c0, %c0_0] : memref<16x32xbf16, #tpu.memory_space<vmem>>, vector<16x32xbf16>
    %1 = arith.extf %0 : vector<16x32xbf16> to vector<16x32xf32>
    %cst = arith.constant dense<0.000000e+00> : vector<16xf32>
    %2 = vector.multi_reduction <add>, %1, %cst [1] : vector<16x32xf32> to vector<16xf32>
    %3 = vector.shape_cast %2 : vector<16xf32> to vector<16x1xf32>
    %cst_1 = arith.constant 3.200000e+01 : f32
    %4 = vector.broadcast %cst_1 : f32 to vector<16x1xf32>
    %5 = arith.divf %3, %4 : vector<16x1xf32>
    %6 = vector.broadcast %5 : vector<16x1xf32> to vector<16x32xf32>
    %7 = arith.subf %1, %6 : vector<16x32xf32>
    %8 = arith.mulf %7, %7 : vector<16x32xf32>
    %cst_2 = arith.constant dense<0.000000e+00> : vector<16xf32>
    %9 = vector.multi_reduction <add>, %8, %cst_2 [1] : vector<16x32xf32> to vector<16xf32>
    %10 = vector.shape_cast %9 : vector<16xf32> to vector<16x1xf32>
    %cst_3 = arith.constant 3.200000e+01 : f32
    %11 = vector.broadcast %cst_3 : f32 to vector<16x1xf32>
    %12 = arith.divf %10, %11 : vector<16x1xf32>
    %13 = vector.broadcast %5 : vector<16x1xf32> to vector<16x32xf32>
    %14 = arith.subf %1, %13 : vector<16x32xf32>
    %cst_4 = arith.constant 9.99999974E-6 : f32
    %15 = vector.broadcast %cst_4 : f32 to vector<16x1xf32>
    %16 = arith.addf %12, %15 : vector<16x1xf32>
    %17 = math.rsqrt %16 : vector<16x1xf32>
    %18 = vector.broadcast %17 : vector<16x1xf32> to vector<16x32xf32>
    %19 = arith.mulf %14, %18 : vector<16x32xf32>
    %c0_5 = arith.constant 0 : index
    %c0_6 = arith.constant 0 : index
    %20 = vector.load %arg2[%c0_5, %c0_6] : memref<1x32xf32, #tpu.memory_space<vmem>>, vector<1x32xf32>
    %21 = vector.broadcast %20 : vector<1x32xf32> to vector<16x32xf32>
    %22 = arith.mulf %19, %21 : vector<16x32xf32>
    %c0_7 = arith.constant 0 : index
    %c0_8 = arith.constant 0 : index
    %23 = vector.load %arg3[%c0_7, %c0_8] : memref<1x32xf32, #tpu.memory_space<vmem>>, vector<1x32xf32>
    %24 = vector.broadcast %23 : vector<1x32xf32> to vector<16x32xf32>
    %25 = arith.addf %22, %24 : vector<16x32xf32>
    %26 = arith.truncf %25 : vector<16x32xf32> to vector<16x32xbf16>
    %c0_9 = arith.constant 0 : index
    %c0_10 = arith.constant 0 : index
    %27 = vector.load %arg4[%c0_9, %c0_10] : memref<16x32xbf16, #tpu.memory_space<vmem>>, vector<16x32xbf16>
    tpu.vector_store %arg4[%c0_9, %c0_10], %26 {strides = array<i32>} : memref<16x32xbf16, #tpu.memory_space<vmem>>, vector<16x32xbf16>,
    return
  }
  func.func @transform_0(%arg0: i32) -> (i32, i32) {
    %c0_i32 = arith.constant 0 : i32
    %c0_i32_0 = arith.constant 0 : i32
    return %arg0, %c0_i32 : i32, i32
  }
  func.func @transform_1(%arg0: i32) -> (i32, i32) {
    %c0_i32 = arith.constant 0 : i32
    %c0_i32_0 = arith.constant 0 : i32
    %c0_i32_1 = arith.constant 0 : i32
    return %c0_i32, %c0_i32_0 : i32, i32
  }
  func.func @transform_2(%arg0: i32) -> (i32, i32) {
    %c0_i32 = arith.constant 0 : i32
    %c0_i32_0 = arith.constant 0 : i32
    %c0_i32_1 = arith.constant 0 : i32
    return %c0_i32, %c0_i32_0 : i32, i32
  }
  func.func @transform_3(%arg0: i32) -> (i32, i32) {
    %c0_i32 = arith.constant 0 : i32
    %c0_i32_0 = arith.constant 0 : i32
    return %arg0, %c0_i32 : i32, i32
  }
}

module attributes {stable_mosaic.version = 11 : i64} {
  func.func @_dense_add_ln_kernel(%arg0: i32, %arg1: memref<16x32xbf16, #tpu.memory_space<vmem>>, %arg2: memref<32x32xbf16, #tpu.memory_space<vmem>>, %arg3: memref<1x32xf32, #tpu.memory_space<vmem>>, %arg4: memref<16x32xbf16, #tpu.memory_space<vmem>>, %arg5: memref<1x32xf32, #tpu.memory_space<vmem>>, %arg6: memref<1x32xf32, #tpu.memory_space<vmem>>, %arg7: memref<16x32xbf16, #tpu.memory_space<vmem>>) attributes {dimension_semantics = [#tpu.dimension_semantics<parallel>], iteration_bounds = array<i64: 1>, scalar_prefetch = 0 : i64, scratch_operands = 0 : i64, tpu.core_type = #tpu.core_type<tc>, window_params = [{transform_indices = @transform_0, window_bounds = array<i64: 16, 32>}, {pipeline_mode = #tpu.pipeline_mode<synchronous>, transform_indices = @transform_1, window_bounds = array<i64: 32, 32>}, {pipeline_mode = #tpu.pipeline_mode<synchronous>, transform_indices = @transform_2, window_bounds = array<i64: 1, 32>}, {transform_indices = @transform_3, window_bounds = array<i64: 16, 32>}, {pipeline_mode = #tpu.pipeline_mode<synchronous>, transform_indices = @transform_4, window_bounds = array<i64: 1, 32>}, {pipeline_mode = #tpu.pipeline_mode<synchronous>, transform_indices = @transform_5, window_bounds = array<i64: 1, 32>}, {transform_indices = @transform_6, window_bounds = array<i64: 16, 32>}]} {
    %c0 = arith.constant 0 : index
    %c0_0 = arith.constant 0 : index
    %0 = vector.load %arg1[%c0, %c0_0] : memref<16x32xbf16, #tpu.memory_space<vmem>>, vector<16x32xbf16>
    %c0_1 = arith.constant 0 : index
    %c0_2 = arith.constant 0 : index
    %1 = vector.load %arg2[%c0_1, %c0_2] : memref<32x32xbf16, #tpu.memory_space<vmem>>, vector<32x32xbf16>
    %cst = arith.constant dense<0.000000e+00> : vector<16x32xf32>
    %2 = tpu.matmul %0, %1, %cst {dimension_numbers = #tpu.dot_dimension_numbers<[1], [0], [0], [1], [0, 0, 1, 1], [], []>} : vector<16x32xbf16>, vector<32x32xbf16>, vector<16x32xf32> -> vector<16x32xf32>
    %c0_3 = arith.constant 0 : index
    %c0_4 = arith.constant 0 : index
    %3 = vector.load %arg3[%c0_3, %c0_4] : memref<1x32xf32, #tpu.memory_space<vmem>>, vector<1x32xf32>
    %4 = vector.broadcast %3 : vector<1x32xf32> to vector<16x32xf32>
    %5 = arith.addf %2, %4 : vector<16x32xf32>
    %c0_5 = arith.constant 0 : index
    %c0_6 = arith.constant 0 : index
    %6 = vector.load %arg4[%c0_5, %c0_6] : memref<16x32xbf16, #tpu.memory_space<vmem>>, vector<16x32xbf16>
    %7 = arith.extf %6 : vector<16x32xbf16> to vector<16x32xf32>
    %8 = arith.addf %5, %7 : vector<16x32xf32>
    %cst_7 = arith.constant dense<0.000000e+00> : vector<16xf32>
    %9 = vector.multi_reduction <add>, %8, %cst_7 [1] : vector<16x32xf32> to vector<16xf32>
    %10 = vector.shape_cast %9 : vector<16xf32> to vector<16x1xf32>
    %cst_8 = arith.constant 3.200000e+01 : f32
    %11 = vector.broadcast %cst_8 : f32 to vector<16x1xf32>
    %12 = arith.divf %10, %11 : vector<16x1xf32>
    %13 = vector.broadcast %12 : vector<16x1xf32> to vector<16x32xf32>
    %14 = arith.subf %8, %13 : vector<16x32xf32>
    %15 = arith.mulf %14, %14 : vector<16x32xf32>
    %cst_9 = arith.constant dense<0.000000e+00> : vector<16xf32>
    %16 = vector.multi_reduction <add>, %15, %cst_9 [1] : vector<16x32xf32> to vector<16xf32>
    %17 = vector.shape_cast %16 : vector<16xf32> to vector<16x1xf32>
    %cst_10 = arith.constant 3.200000e+01 : f32
    %18 = vector.broadcast %cst_10 : f32 to vector<16x1xf32>
    %19 = arith.divf %17, %18 : vector<16x1xf32>
    %20 = vector.broadcast %12 : vector<16x1xf32> to vector<16x32xf32>
    %21 = arith.subf %8, %20 : vector<16x32xf32>
    %cst_11 = arith.constant 9.99999974E-6 : f32
    %22 = vector.broadcast %cst_11 : f32 to vector<16x1xf32>
    %23 = arith.addf %19, %22 : vector<16x1xf32>
    %24 = math.rsqrt %23 : vector<16x1xf32>
    %25 = vector.broadcast %24 : vector<16x1xf32> to vector<16x32xf32>
    %26 = arith.mulf %21, %25 : vector<16x32xf32>
    %c0_12 = arith.constant 0 : index
    %c0_13 = arith.constant 0 : index
    %27 = vector.load %arg5[%c0_12, %c0_13] : memref<1x32xf32, #tpu.memory_space<vmem>>, vector<1x32xf32>
    %28 = vector.broadcast %27 : vector<1x32xf32> to vector<16x32xf32>
    %29 = arith.mulf %26, %28 : vector<16x32xf32>
    %c0_14 = arith.constant 0 : index
    %c0_15 = arith.constant 0 : index
    %30 = vector.load %arg6[%c0_14, %c0_15] : memref<1x32xf32, #tpu.memory_space<vmem>>, vector<1x32xf32>
    %31 = vector.broadcast %30 : vector<1x32xf32> to vector<16x32xf32>
    %32 = arith.addf %29, %31 : vector<16x32xf32>
    %33 = arith.truncf %32 : vector<16x32xf32> to vector<16x32xbf16>
    %c0_16 = arith.constant 0 : index
    %c0_17 = arith.constant 0 : index
    %34 = vector.load %arg7[%c0_16, %c0_17] : memref<16x32xbf16, #tpu.memory_space<vmem>>, vector<16x32xbf16>
    tpu.vector_store %arg7[%c0_16, %c0_17], %33 {strides = array<i32>} : memref<16x32xbf16, #tpu.memory_space<vmem>>, vector<16x32xbf16>,
    return
  }
  func.func @transform_0(%arg0: i32) -> (i32, i32) {
    %c0_i32 = arith.constant 0 : i32
    %c0_i32_0 = arith.constant 0 : i32
    return %arg0, %c0_i32 : i32, i32
  }
  func.func @transform_1(%arg0: i32) -> (i32, i32) {
    %c0_i32 = arith.constant 0 : i32
    %c0_i32_0 = arith.constant 0 : i32
    %c0_i32_1 = arith.constant 0 : i32
    return %c0_i32, %c0_i32_0 : i32, i32
  }
  func.func @transform_2(%arg0: i32) -> (i32, i32) {
    %c0_i32 = arith.constant 0 : i32
    %c0_i32_0 = arith.constant 0 : i32
    %c0_i32_1 = arith.constant 0 : i32
    return %c0_i32, %c0_i32_0 : i32, i32
  }
  func.func @transform_3(%arg0: i32) -> (i32, i32) {
    %c0_i32 = arith.constant 0 : i32
    %c0_i32_0 = arith.constant 0 : i32
    return %arg0, %c0_i32 : i32, i32
  }
  func.func @transform_4(%arg0: i32) -> (i32, i32) {
    %c0_i32 = arith.constant 0 : i32
    %c0_i32_0 = arith.constant 0 : i32
    %c0_i32_1 = arith.constant 0 : i32
    return %c0_i32, %c0_i32_0 : i32, i32
  }
  func.func @transform_5(%arg0: i32) -> (i32, i32) {
    %c0_i32 = arith.constant 0 : i32
    %c0_i32_0 = arith.constant 0 : i32
    %c0_i32_1 = arith.constant 0 : i32
    return %c0_i32, %c0_i32_0 : i32, i32
  }
  func.func @transform_6(%arg0: i32) -> (i32, i32) {
    %c0_i32 = arith.constant 0 : i32
    %c0_i32_0 = arith.constant 0 : i32
    return %arg0, %c0_i32 : i32, i32
  }
}

module attributes {stable_mosaic.version = 11 : i64} {
  func.func @_flash_attn_kernel(%arg0: i32, %arg1: i32, %arg2: i32, %arg3: i32, %arg4: memref<8x96xbf16, #tpu.memory_space<vmem>>, %arg5: memref<8x96xbf16, #tpu.memory_space<vmem>>, %arg6: memref<8x96xbf16, #tpu.memory_space<vmem>>, %arg7: memref<1x1x8xf32, #tpu.memory_space<vmem>>, %arg8: memref<8x32xbf16, #tpu.memory_space<vmem>>) attributes {dimension_semantics = [#tpu.dimension_semantics<parallel>, #tpu.dimension_semantics<parallel>, #tpu.dimension_semantics<parallel>, #tpu.dimension_semantics<arbitrary>], iteration_bounds = array<i64: 2, 1, 1, 1>, scalar_prefetch = 0 : i64, scratch_operands = 0 : i64, tpu.core_type = #tpu.core_type<tc>, window_params = [{transform_indices = @transform_0, window_bounds = array<i64: 8, 96>}, {transform_indices = @transform_1, window_bounds = array<i64: 8, 96>}, {transform_indices = @transform_2, window_bounds = array<i64: 8, 96>}, {transform_indices = @transform_3, window_bounds = array<i64: 1, 1, 8>}, {transform_indices = @transform_4, window_bounds = array<i64: 8, 32>}]} {
    %c0 = arith.constant 0 : index
    %c0_0 = arith.constant 0 : index
    %c0_1 = arith.constant 0 : index
    %0 = vector.load %arg7[%c0, %c0_0, %c0_1] : memref<1x1x8xf32, #tpu.memory_space<vmem>>, vector<1x1x8xf32>
    %1 = vector.shape_cast %0 : vector<1x1x8xf32> to vector<1x8xf32>
    %c0_2 = arith.constant 0 : index
    %c0_3 = arith.constant 0 : index
    %2 = vector.load %arg4[%c0_2, %c0_3] : memref<8x96xbf16, #tpu.memory_space<vmem>>, vector<8x8xbf16>
    %c0_4 = arith.constant 0 : index
    %c32 = arith.constant 32 : index
    %3 = vector.load %arg5[%c0_4, %c32] : memref<8x96xbf16, #tpu.memory_space<vmem>>, vector<8x8xbf16>
    %c0_5 = arith.constant 0 : index
    %c64 = arith.constant 64 : index
    %4 = vector.load %arg6[%c0_5, %c64] : memref<8x96xbf16, #tpu.memory_space<vmem>>, vector<8x8xbf16>
    "tpu.trace_start"() <{level = 10 : i32, message = "qd,kd->qk"}> : () -> ()
    %cst = arith.constant dense<0.000000e+00> : vector<8x8xf32>
    %5 = tpu.matmul %2, %3, %cst {dimension_numbers = #tpu.dot_dimension_numbers<[1], [1], [0], [0], [0, 0, 1, 0], [], []>} : vector<8x8xbf16>, vector<8x8xbf16>, vector<8x8xf32> -> vector<8x8xf32>
    "tpu.trace_stop"() : () -> ()
    %6 = vector.broadcast %1 : vector<1x8xf32> to vector<8x8xf32>
    %7 = arith.addf %5, %6 : vector<8x8xf32>
    %cst_6 = arith.constant dense<0xFF800000> : vector<8xf32>
    %8 = vector.multi_reduction <maximumf>, %7, %cst_6 [1] : vector<8x8xf32> to vector<8xf32>
    %9 = vector.shape_cast %8 : vector<8xf32> to vector<8x1xf32>
    %10 = vector.broadcast %9 : vector<8x1xf32> to vector<8x8xf32>
    %11 = arith.subf %7, %10 : vector<8x8xf32>
    %12 = math.exp %11 : vector<8x8xf32>
    %cst_7 = arith.constant dense<0.000000e+00> : vector<8xf32>
    %13 = vector.multi_reduction <add>, %12, %cst_7 [1] : vector<8x8xf32> to vector<8xf32>
    %14 = vector.shape_cast %13 : vector<8xf32> to vector<8x1xf32>
    %15 = arith.truncf %12 : vector<8x8xf32> to vector<8x8xbf16>
    %cst_8 = arith.constant dense<0.000000e+00> : vector<8x8xf32>
    %16 = tpu.matmul %15, %4, %cst_8 {dimension_numbers = #tpu.dot_dimension_numbers<[1], [0], [0], [1], [0, 0, 1, 1], [], []>} : vector<8x8xbf16>, vector<8x8xbf16>, vector<8x8xf32> -> vector<8x8xf32>
    %17 = tpu.reciprocal %14 {approx = true} : vector<8x1xf32> -> vector<8x1xf32>
    %18 = vector.broadcast %17 : vector<8x1xf32> to vector<8x8xf32>
    %19 = arith.mulf %16, %18 : vector<8x8xf32>
    %c0_9 = arith.constant 0 : index
    %c8 = arith.constant 8 : index
    %20 = vector.load %arg4[%c0_9, %c8] : memref<8x96xbf16, #tpu.memory_space<vmem>>, vector<8x8xbf16>
    %c0_10 = arith.constant 0 : index
    %c40 = arith.constant 40 : index
    %21 = vector.load %arg5[%c0_10, %c40] : memref<8x96xbf16, #tpu.memory_space<vmem>>, vector<8x8xbf16>
    %c0_11 = arith.constant 0 : index
    %c72 = arith.constant 72 : index
    %22 = vector.load %arg6[%c0_11, %c72] : memref<8x96xbf16, #tpu.memory_space<vmem>>, vector<8x8xbf16>
    "tpu.trace_start"() <{level = 10 : i32, message = "qd,kd->qk"}> : () -> ()
    %cst_12 = arith.constant dense<0.000000e+00> : vector<8x8xf32>
    %23 = tpu.matmul %20, %21, %cst_12 {dimension_numbers = #tpu.dot_dimension_numbers<[1], [1], [0], [0], [0, 0, 1, 0], [], []>} : vector<8x8xbf16>, vector<8x8xbf16>, vector<8x8xf32> -> vector<8x8xf32>
    "tpu.trace_stop"() : () -> ()
    %24 = vector.broadcast %1 : vector<1x8xf32> to vector<8x8xf32>
    %25 = arith.addf %23, %24 : vector<8x8xf32>
    %cst_13 = arith.constant dense<0xFF800000> : vector<8xf32>
    %26 = vector.multi_reduction <maximumf>, %25, %cst_13 [1] : vector<8x8xf32> to vector<8xf32>
    %27 = vector.shape_cast %26 : vector<8xf32> to vector<8x1xf32>
    %28 = vector.broadcast %27 : vector<8x1xf32> to vector<8x8xf32>
    %29 = arith.subf %25, %28 : vector<8x8xf32>
    %30 = math.exp %29 : vector<8x8xf32>
    %cst_14 = arith.constant dense<0.000000e+00> : vector<8xf32>
    %31 = vector.multi_reduction <add>, %30, %cst_14 [1] : vector<8x8xf32> to vector<8xf32>
    %32 = vector.shape_cast %31 : vector<8xf32> to vector<8x1xf32>
    %33 = arith.truncf %30 : vector<8x8xf32> to vector<8x8xbf16>
    %cst_15 = arith.constant dense<0.000000e+00> : vector<8x8xf32>
    %34 = tpu.matmul %33, %22, %cst_15 {dimension_numbers = #tpu.dot_dimension_numbers<[1], [0], [0], [1], [0, 0, 1, 1], [], []>} : vector<8x8xbf16>, vector<8x8xbf16>, vector<8x8xf32> -> vector<8x8xf32>
    %35 = tpu.reciprocal %32 {approx = true} : vector<8x1xf32> -> vector<8x1xf32>
    %36 = vector.broadcast %35 : vector<8x1xf32> to vector<8x8xf32>
    %37 = arith.mulf %34, %36 : vector<8x8xf32>
    %c0_16 = arith.constant 0 : index
    %c16 = arith.constant 16 : index
    %38 = vector.load %arg4[%c0_16, %c16] : memref<8x96xbf16, #tpu.memory_space<vmem>>, vector<8x8xbf16>
    %c0_17 = arith.constant 0 : index
    %c48 = arith.constant 48 : index
    %39 = vector.load %arg5[%c0_17, %c48] : memref<8x96xbf16, #tpu.memory_space<vmem>>, vector<8x8xbf16>
    %c0_18 = arith.constant 0 : index
    %c80 = arith.constant 80 : index
    %40 = vector.load %arg6[%c0_18, %c80] : memref<8x96xbf16, #tpu.memory_space<vmem>>, vector<8x8xbf16>
    "tpu.trace_start"() <{level = 10 : i32, message = "qd,kd->qk"}> : () -> ()
    %cst_19 = arith.constant dense<0.000000e+00> : vector<8x8xf32>
    %41 = tpu.matmul %38, %39, %cst_19 {dimension_numbers = #tpu.dot_dimension_numbers<[1], [1], [0], [0], [0, 0, 1, 0], [], []>} : vector<8x8xbf16>, vector<8x8xbf16>, vector<8x8xf32> -> vector<8x8xf32>
    "tpu.trace_stop"() : () -> ()
    %42 = vector.broadcast %1 : vector<1x8xf32> to vector<8x8xf32>
    %43 = arith.addf %41, %42 : vector<8x8xf32>
    %cst_20 = arith.constant dense<0xFF800000> : vector<8xf32>
    %44 = vector.multi_reduction <maximumf>, %43, %cst_20 [1] : vector<8x8xf32> to vector<8xf32>
    %45 = vector.shape_cast %44 : vector<8xf32> to vector<8x1xf32>
    %46 = vector.broadcast %45 : vector<8x1xf32> to vector<8x8xf32>
    %47 = arith.subf %43, %46 : vector<8x8xf32>
    %48 = math.exp %47 : vector<8x8xf32>
    %cst_21 = arith.constant dense<0.000000e+00> : vector<8xf32>
    %49 = vector.multi_reduction <add>, %48, %cst_21 [1] : vector<8x8xf32> to vector<8xf32>
    %50 = vector.shape_cast %49 : vector<8xf32> to vector<8x1xf32>
    %51 = arith.truncf %48 : vector<8x8xf32> to vector<8x8xbf16>
    %cst_22 = arith.constant dense<0.000000e+00> : vector<8x8xf32>
    %52 = tpu.matmul %51, %40, %cst_22 {dimension_numbers = #tpu.dot_dimension_numbers<[1], [0], [0], [1], [0, 0, 1, 1], [], []>} : vector<8x8xbf16>, vector<8x8xbf16>, vector<8x8xf32> -> vector<8x8xf32>
    %53 = tpu.reciprocal %50 {approx = true} : vector<8x1xf32> -> vector<8x1xf32>
    %54 = vector.broadcast %53 : vector<8x1xf32> to vector<8x8xf32>
    %55 = arith.mulf %52, %54 : vector<8x8xf32>
    %c0_23 = arith.constant 0 : index
    %c24 = arith.constant 24 : index
    %56 = vector.load %arg4[%c0_23, %c24] : memref<8x96xbf16, #tpu.memory_space<vmem>>, vector<8x8xbf16>
    %c0_24 = arith.constant 0 : index
    %c56 = arith.constant 56 : index
    %57 = vector.load %arg5[%c0_24, %c56] : memref<8x96xbf16, #tpu.memory_space<vmem>>, vector<8x8xbf16>
    %c0_25 = arith.constant 0 : index
    %c88 = arith.constant 88 : index
    %58 = vector.load %arg6[%c0_25, %c88] : memref<8x96xbf16, #tpu.memory_space<vmem>>, vector<8x8xbf16>
    "tpu.trace_start"() <{level = 10 : i32, message = "qd,kd->qk"}> : () -> ()
    %cst_26 = arith.constant dense<0.000000e+00> : vector<8x8xf32>
    %59 = tpu.matmul %56, %57, %cst_26 {dimension_numbers = #tpu.dot_dimension_numbers<[1], [1], [0], [0], [0, 0, 1, 0], [], []>} : vector<8x8xbf16>, vector<8x8xbf16>, vector<8x8xf32> -> vector<8x8xf32>
    "tpu.trace_stop"() : () -> ()
    %60 = vector.broadcast %1 : vector<1x8xf32> to vector<8x8xf32>
    %61 = arith.addf %59, %60 : vector<8x8xf32>
    %cst_27 = arith.constant dense<0xFF800000> : vector<8xf32>
    %62 = vector.multi_reduction <maximumf>, %61, %cst_27 [1] : vector<8x8xf32> to vector<8xf32>
    %63 = vector.shape_cast %62 : vector<8xf32> to vector<8x1xf32>
    %64 = vector.broadcast %63 : vector<8x1xf32> to vector<8x8xf32>
    %65 = arith.subf %61, %64 : vector<8x8xf32>
    %66 = math.exp %65 : vector<8x8xf32>
    %cst_28 = arith.constant dense<0.000000e+00> : vector<8xf32>
    %67 = vector.multi_reduction <add>, %66, %cst_28 [1] : vector<8x8xf32> to vector<8xf32>
    %68 = vector.shape_cast %67 : vector<8xf32> to vector<8x1xf32>
    %69 = arith.truncf %66 : vector<8x8xf32> to vector<8x8xbf16>
    %cst_29 = arith.constant dense<0.000000e+00> : vector<8x8xf32>
    %70 = tpu.matmul %69, %58, %cst_29 {dimension_numbers = #tpu.dot_dimension_numbers<[1], [0], [0], [1], [0, 0, 1, 1], [], []>} : vector<8x8xbf16>, vector<8x8xbf16>, vector<8x8xf32> -> vector<8x8xf32>
    %71 = tpu.reciprocal %68 {approx = true} : vector<8x1xf32> -> vector<8x1xf32>
    %72 = vector.broadcast %71 : vector<8x1xf32> to vector<8x8xf32>
    %73 = arith.mulf %70, %72 : vector<8x8xf32>
    %74 = tpu.concatenate %19, %37, %55, %73 in 1 : vector<8x8xf32>, vector<8x8xf32>, vector<8x8xf32>, vector<8x8xf32> -> vector<8x32xf32>
    %75 = arith.truncf %74 : vector<8x32xf32> to vector<8x32xbf16>
    %c0_30 = arith.constant 0 : index
    %c0_31 = arith.constant 0 : index
    %76 = vector.load %arg8[%c0_30, %c0_31] : memref<8x32xbf16, #tpu.memory_space<vmem>>, vector<8x32xbf16>
    tpu.vector_store %arg8[%c0_30, %c0_31], %75 {strides = array<i32>} : memref<8x32xbf16, #tpu.memory_space<vmem>>, vector<8x32xbf16>,
    return
  }
  func.func @transform_0(%arg0: i32, %arg1: i32, %arg2: i32, %arg3: i32) -> (i32, i32) {
    %c1_i32 = arith.constant 1 : i32
    %0 = arith.muli %arg0, %c1_i32 : i32
    %1 = arith.addi %0, %arg2 : i32
    %c0_i32 = arith.constant 0 : i32
    %c0_i32_0 = arith.constant 0 : i32
    return %1, %c0_i32 : i32, i32
  }
  func.func @transform_1(%arg0: i32, %arg1: i32, %arg2: i32, %arg3: i32) -> (i32, i32) {
    %c1_i32 = arith.constant 1 : i32
    %0 = arith.muli %arg0, %c1_i32 : i32
    %1 = arith.addi %0, %arg3 : i32
    %c0_i32 = arith.constant 0 : i32
    %c0_i32_0 = arith.constant 0 : i32
    return %1, %c0_i32 : i32, i32
  }
  func.func @transform_2(%arg0: i32, %arg1: i32, %arg2: i32, %arg3: i32) -> (i32, i32) {
    %c1_i32 = arith.constant 1 : i32
    %0 = arith.muli %arg0, %c1_i32 : i32
    %1 = arith.addi %0, %arg3 : i32
    %c0_i32 = arith.constant 0 : i32
    %c0_i32_0 = arith.constant 0 : i32
    return %1, %c0_i32 : i32, i32
  }
  func.func @transform_3(%arg0: i32, %arg1: i32, %arg2: i32, %arg3: i32) -> (i32, i32, i32) {
    %c0_i32 = arith.constant 0 : i32
    %c0_i32_0 = arith.constant 0 : i32
    return %arg0, %c0_i32, %arg3 : i32, i32, i32
  }
  func.func @transform_4(%arg0: i32, %arg1: i32, %arg2: i32, %arg3: i32) -> (i32, i32) {
    %c1_i32 = arith.constant 1 : i32
    %0 = arith.muli %arg0, %c1_i32 : i32
    %1 = arith.addi %0, %arg2 : i32
    %c0_i32 = arith.constant 0 : i32
    return %1, %arg1 : i32, i32
  }
}

module attributes {stable_mosaic.version = 11 : i64} {
  func.func @_dense_add_ln_kernel(%arg0: i32, %arg1: memref<16x64xbf16, #tpu.memory_space<vmem>>, %arg2: memref<64x32xbf16, #tpu.memory_space<vmem>>, %arg3: memref<1x32xf32, #tpu.memory_space<vmem>>, %arg4: memref<16x32xbf16, #tpu.memory_space<vmem>>, %arg5: memref<1x32xf32, #tpu.memory_space<vmem>>, %arg6: memref<1x32xf32, #tpu.memory_space<vmem>>, %arg7: memref<16x32xbf16, #tpu.memory_space<vmem>>) attributes {dimension_semantics = [#tpu.dimension_semantics<parallel>], iteration_bounds = array<i64: 1>, scalar_prefetch = 0 : i64, scratch_operands = 0 : i64, tpu.core_type = #tpu.core_type<tc>, window_params = [{transform_indices = @transform_0, window_bounds = array<i64: 16, 64>}, {pipeline_mode = #tpu.pipeline_mode<synchronous>, transform_indices = @transform_1, window_bounds = array<i64: 64, 32>}, {pipeline_mode = #tpu.pipeline_mode<synchronous>, transform_indices = @transform_2, window_bounds = array<i64: 1, 32>}, {transform_indices = @transform_3, window_bounds = array<i64: 16, 32>}, {pipeline_mode = #tpu.pipeline_mode<synchronous>, transform_indices = @transform_4, window_bounds = array<i64: 1, 32>}, {pipeline_mode = #tpu.pipeline_mode<synchronous>, transform_indices = @transform_5, window_bounds = array<i64: 1, 32>}, {transform_indices = @transform_6, window_bounds = array<i64: 16, 32>}]} {
    %c0 = arith.constant 0 : index
    %c0_0 = arith.constant 0 : index
    %0 = vector.load %arg1[%c0, %c0_0] : memref<16x64xbf16, #tpu.memory_space<vmem>>, vector<16x64xbf16>
    %c0_1 = arith.constant 0 : index
    %c0_2 = arith.constant 0 : index
    %1 = vector.load %arg2[%c0_1, %c0_2] : memref<64x32xbf16, #tpu.memory_space<vmem>>, vector<64x32xbf16>
    %cst = arith.constant dense<0.000000e+00> : vector<16x32xf32>
    %2 = tpu.matmul %0, %1, %cst {dimension_numbers = #tpu.dot_dimension_numbers<[1], [0], [0], [1], [0, 0, 1, 1], [], []>} : vector<16x64xbf16>, vector<64x32xbf16>, vector<16x32xf32> -> vector<16x32xf32>
    %c0_3 = arith.constant 0 : index
    %c0_4 = arith.constant 0 : index
    %3 = vector.load %arg3[%c0_3, %c0_4] : memref<1x32xf32, #tpu.memory_space<vmem>>, vector<1x32xf32>
    %4 = vector.broadcast %3 : vector<1x32xf32> to vector<16x32xf32>
    %5 = arith.addf %2, %4 : vector<16x32xf32>
    %c0_5 = arith.constant 0 : index
    %c0_6 = arith.constant 0 : index
    %6 = vector.load %arg4[%c0_5, %c0_6] : memref<16x32xbf16, #tpu.memory_space<vmem>>, vector<16x32xbf16>
    %7 = arith.extf %6 : vector<16x32xbf16> to vector<16x32xf32>
    %8 = arith.addf %5, %7 : vector<16x32xf32>
    %cst_7 = arith.constant dense<0.000000e+00> : vector<16xf32>
    %9 = vector.multi_reduction <add>, %8, %cst_7 [1] : vector<16x32xf32> to vector<16xf32>
    %10 = vector.shape_cast %9 : vector<16xf32> to vector<16x1xf32>
    %cst_8 = arith.constant 3.200000e+01 : f32
    %11 = vector.broadcast %cst_8 : f32 to vector<16x1xf32>
    %12 = arith.divf %10, %11 : vector<16x1xf32>
    %13 = vector.broadcast %12 : vector<16x1xf32> to vector<16x32xf32>
    %14 = arith.subf %8, %13 : vector<16x32xf32>
    %15 = arith.mulf %14, %14 : vector<16x32xf32>
    %cst_9 = arith.constant dense<0.000000e+00> : vector<16xf32>
    %16 = vector.multi_reduction <add>, %15, %cst_9 [1] : vector<16x32xf32> to vector<16xf32>
    %17 = vector.shape_cast %16 : vector<16xf32> to vector<16x1xf32>
    %cst_10 = arith.constant 3.200000e+01 : f32
    %18 = vector.broadcast %cst_10 : f32 to vector<16x1xf32>
    %19 = arith.divf %17, %18 : vector<16x1xf32>
    %20 = vector.broadcast %12 : vector<16x1xf32> to vector<16x32xf32>
    %21 = arith.subf %8, %20 : vector<16x32xf32>
    %cst_11 = arith.constant 9.99999974E-6 : f32
    %22 = vector.broadcast %cst_11 : f32 to vector<16x1xf32>
    %23 = arith.addf %19, %22 : vector<16x1xf32>
    %24 = math.rsqrt %23 : vector<16x1xf32>
    %25 = vector.broadcast %24 : vector<16x1xf32> to vector<16x32xf32>
    %26 = arith.mulf %21, %25 : vector<16x32xf32>
    %c0_12 = arith.constant 0 : index
    %c0_13 = arith.constant 0 : index
    %27 = vector.load %arg5[%c0_12, %c0_13] : memref<1x32xf32, #tpu.memory_space<vmem>>, vector<1x32xf32>
    %28 = vector.broadcast %27 : vector<1x32xf32> to vector<16x32xf32>
    %29 = arith.mulf %26, %28 : vector<16x32xf32>
    %c0_14 = arith.constant 0 : index
    %c0_15 = arith.constant 0 : index
    %30 = vector.load %arg6[%c0_14, %c0_15] : memref<1x32xf32, #tpu.memory_space<vmem>>, vector<1x32xf32>
    %31 = vector.broadcast %30 : vector<1x32xf32> to vector<16x32xf32>
    %32 = arith.addf %29, %31 : vector<16x32xf32>
    %33 = arith.truncf %32 : vector<16x32xf32> to vector<16x32xbf16>
    %c0_16 = arith.constant 0 : index
    %c0_17 = arith.constant 0 : index
    %34 = vector.load %arg7[%c0_16, %c0_17] : memref<16x32xbf16, #tpu.memory_space<vmem>>, vector<16x32xbf16>
    tpu.vector_store %arg7[%c0_16, %c0_17], %33 {strides = array<i32>} : memref<16x32xbf16, #tpu.memory_space<vmem>>, vector<16x32xbf16>,
    return
  }
  func.func @transform_0(%arg0: i32) -> (i32, i32) {
    %c0_i32 = arith.constant 0 : i32
    %c0_i32_0 = arith.constant 0 : i32
    return %arg0, %c0_i32 : i32, i32
  }
  func.func @transform_1(%arg0: i32) -> (i32, i32) {
    %c0_i32 = arith.constant 0 : i32
    %c0_i32_0 = arith.constant 0 : i32
    %c0_i32_1 = arith.constant 0 : i32
    return %c0_i32, %c0_i32_0 : i32, i32
  }
  func.func @transform_2(%arg0: i32) -> (i32, i32) {
    %c0_i32 = arith.constant 0 : i32
    %c0_i32_0 = arith.constant 0 : i32
    %c0_i32_1 = arith.constant 0 : i32
    return %c0_i32, %c0_i32_0 : i32, i32
  }
  func.func @transform_3(%arg0: i32) -> (i32, i32) {
    %c0_i32 = arith.constant 0 : i32
    %c0_i32_0 = arith.constant 0 : i32
    return %arg0, %c0_i32 : i32, i32
  }
  func.func @transform_4(%arg0: i32) -> (i32, i32) {
    %c0_i32 = arith.constant 0 : i32
    %c0_i32_0 = arith.constant 0 : i32
    %c0_i32_1 = arith.constant 0 : i32
    return %c0_i32, %c0_i32_0 : i32, i32
  }
  func.func @transform_5(%arg0: i32) -> (i32, i32) {
    %c0_i32 = arith.constant 0 : i32
    %c0_i32_0 = arith.constant 0 : i32
    %c0_i32_1 = arith.constant 0 : i32
    return %c0_i32, %c0_i32_0 : i32, i32
  }
  func.func @transform_6(%arg0: i32) -> (i32, i32) {
    %c0_i32 = arith.constant 0 : i32
    %c0_i32_0 = arith.constant 0 : i32
    return %arg0, %c0_i32 : i32, i32
  }
}

module attributes {stable_mosaic.version = 11 : i64} {
  func.func @_dense_kernel(%arg0: i32, %arg1: memref<16x32xbf16, #tpu.memory_space<vmem>>, %arg2: memref<32x64xbf16, #tpu.memory_space<vmem>>, %arg3: memref<1x64xf32, #tpu.memory_space<vmem>>, %arg4: memref<16x64xbf16, #tpu.memory_space<vmem>>) attributes {dimension_semantics = [#tpu.dimension_semantics<parallel>], iteration_bounds = array<i64: 1>, scalar_prefetch = 0 : i64, scratch_operands = 0 : i64, tpu.core_type = #tpu.core_type<tc>, window_params = [{transform_indices = @transform_0, window_bounds = array<i64: 16, 32>}, {pipeline_mode = #tpu.pipeline_mode<synchronous>, transform_indices = @transform_1, window_bounds = array<i64: 32, 64>}, {pipeline_mode = #tpu.pipeline_mode<synchronous>, transform_indices = @transform_2, window_bounds = array<i64: 1, 64>}, {transform_indices = @transform_3, window_bounds = array<i64: 16, 64>}]} {
    %c0 = arith.constant 0 : index
    %c0_0 = arith.constant 0 : index
    %0 = vector.load %arg1[%c0, %c0_0] : memref<16x32xbf16, #tpu.memory_space<vmem>>, vector<16x32xbf16>
    %c0_1 = arith.constant 0 : index
    %c0_2 = arith.constant 0 : index
    %1 = vector.load %arg2[%c0_1, %c0_2] : memref<32x64xbf16, #tpu.memory_space<vmem>>, vector<32x64xbf16>
    %cst = arith.constant dense<0.000000e+00> : vector<16x64xf32>
    %2 = tpu.matmul %0, %1, %cst {dimension_numbers = #tpu.dot_dimension_numbers<[1], [0], [0], [1], [0, 0, 1, 1], [], []>} : vector<16x32xbf16>, vector<32x64xbf16>, vector<16x64xf32> -> vector<16x64xf32>
    %c0_3 = arith.constant 0 : index
    %c0_4 = arith.constant 0 : index
    %3 = vector.load %arg3[%c0_3, %c0_4] : memref<1x64xf32, #tpu.memory_space<vmem>>, vector<1x64xf32>
    %4 = vector.broadcast %3 : vector<1x64xf32> to vector<16x64xf32>
    %5 = arith.addf %2, %4 : vector<16x64xf32>
    %6 = arith.mulf %5, %5 : vector<16x64xf32>
    %7 = arith.mulf %5, %6 : vector<16x64xf32>
    %cst_5 = arith.constant 4.471500e-02 : f32
    %8 = vector.broadcast %cst_5 : f32 to vector<16x64xf32>
    %9 = arith.mulf %8, %7 : vector<16x64xf32>
    %10 = arith.addf %5, %9 : vector<16x64xf32>
    %cst_6 = arith.constant 0.797884583 : f32
    %11 = vector.broadcast %cst_6 : f32 to vector<16x64xf32>
    %12 = arith.mulf %11, %10 : vector<16x64xf32>
    %13 = math.tanh %12 : vector<16x64xf32>
    %cst_7 = arith.constant 1.000000e+00 : f32
    %14 = vector.broadcast %cst_7 : f32 to vector<16x64xf32>
    %15 = arith.addf %14, %13 : vector<16x64xf32>
    %cst_8 = arith.constant 5.000000e-01 : f32
    %16 = vector.broadcast %cst_8 : f32 to vector<16x64xf32>
    %17 = arith.mulf %16, %15 : vector<16x64xf32>
    %18 = arith.mulf %5, %17 : vector<16x64xf32>
    %19 = arith.truncf %18 : vector<16x64xf32> to vector<16x64xbf16>
    %c0_9 = arith.constant 0 : index
    %c0_10 = arith.constant 0 : index
    %20 = vector.load %arg4[%c0_9, %c0_10] : memref<16x64xbf16, #tpu.memory_space<vmem>>, vector<16x64xbf16>
    tpu.vector_store %arg4[%c0_9, %c0_10], %19 {strides = array<i32>} : memref<16x64xbf16, #tpu.memory_space<vmem>>, vector<16x64xbf16>,
    return
  }
  func.func @transform_0(%arg0: i32) -> (i32, i32) {
    %c0_i32 = arith.constant 0 : i32
    %c0_i32_0 = arith.constant 0 : i32
    return %arg0, %c0_i32 : i32, i32
  }
  func.func @transform_1(%arg0: i32) -> (i32, i32) {
    %c0_i32 = arith.constant 0 : i32
    %c0_i32_0 = arith.constant 0 : i32
    %c0_i32_1 = arith.constant 0 : i32
    return %c0_i32, %c0_i32_0 : i32, i32
  }
  func.func @transform_2(%arg0: i32) -> (i32, i32) {
    %c0_i32 = arith.constant 0 : i32
    %c0_i32_0 = arith.constant 0 : i32
    %c0_i32_1 = arith.constant 0 : i32
    return %c0_i32, %c0_i32_0 : i32, i32
  }
  func.func @transform_3(%arg0: i32) -> (i32, i32) {
    %c0_i32 = arith.constant 0 : i32
    %c0_i32_0 = arith.constant 0 : i32
    return %arg0, %c0_i32 : i32, i32
  }
}

module attributes {stable_mosaic.version = 11 : i64} {
  func.func @_head_kernel(%arg0: i32, %arg1: memref<2x32xf32, #tpu.memory_space<vmem>>, %arg2: memref<1x32xf32, #tpu.memory_space<vmem>>, %arg3: memref<1x1xf32, #tpu.memory_space<vmem>>, %arg4: memref<2x1xf32, #tpu.memory_space<vmem>>) attributes {dimension_semantics = [#tpu.dimension_semantics<arbitrary>], iteration_bounds = array<i64: 1>, scalar_prefetch = 0 : i64, scratch_operands = 0 : i64, tpu.core_type = #tpu.core_type<tc>, window_params = [{pipeline_mode = #tpu.pipeline_mode<synchronous>, transform_indices = @transform_0, window_bounds = array<i64: 2, 32>}, {pipeline_mode = #tpu.pipeline_mode<synchronous>, transform_indices = @transform_1, window_bounds = array<i64: 1, 32>}, {pipeline_mode = #tpu.pipeline_mode<synchronous>, transform_indices = @transform_2, window_bounds = array<i64: 1, 1>}, {pipeline_mode = #tpu.pipeline_mode<synchronous>, transform_indices = @transform_3, window_bounds = array<i64: 2, 1>}]} {
    %c0 = arith.constant 0 : index
    %c0_0 = arith.constant 0 : index
    %0 = vector.load %arg1[%c0, %c0_0] : memref<2x32xf32, #tpu.memory_space<vmem>>, vector<2x32xf32>
    %c0_1 = arith.constant 0 : index
    %c0_2 = arith.constant 0 : index
    %1 = vector.load %arg2[%c0_1, %c0_2] : memref<1x32xf32, #tpu.memory_space<vmem>>, vector<1x32xf32>
    %2 = vector.broadcast %1 : vector<1x32xf32> to vector<2x32xf32>
    %3 = arith.mulf %0, %2 : vector<2x32xf32>
    %cst = arith.constant dense<0.000000e+00> : vector<2xf32>
    %4 = vector.multi_reduction <add>, %3, %cst [1] : vector<2x32xf32> to vector<2xf32>
    %5 = vector.shape_cast %4 : vector<2xf32> to vector<2x1xf32>
    %c0_3 = arith.constant 0 : index
    %c0_4 = arith.constant 0 : index
    %6 = vector.load %arg3[%c0_3, %c0_4] : memref<1x1xf32, #tpu.memory_space<vmem>>, vector<1x1xf32>
    %7 = vector.broadcast %6 : vector<1x1xf32> to vector<2x1xf32>
    %8 = arith.addf %5, %7 : vector<2x1xf32>
    %9 = arith.negf %8 : vector<2x1xf32>
    %10 = math.exp %9 : vector<2x1xf32>
    %cst_5 = arith.constant 1.000000e+00 : f32
    %11 = vector.broadcast %cst_5 : f32 to vector<2x1xf32>
    %12 = arith.addf %11, %10 : vector<2x1xf32>
    %13 = arith.divf %11, %12 : vector<2x1xf32>
    %c0_6 = arith.constant 0 : index
    %c0_7 = arith.constant 0 : index
    %14 = vector.load %arg4[%c0_6, %c0_7] : memref<2x1xf32, #tpu.memory_space<vmem>>, vector<2x1xf32>
    tpu.vector_store %arg4[%c0_6, %c0_7], %13 {strides = array<i32>} : memref<2x1xf32, #tpu.memory_space<vmem>>, vector<2x1xf32>,
    return
  }
  func.func @transform_0(%arg0: i32) -> (i32, i32) {
    %c0_i32 = arith.constant 0 : i32
    %c0_i32_0 = arith.constant 0 : i32
    %c0_i32_1 = arith.constant 0 : i32
    return %c0_i32, %c0_i32_0 : i32, i32
  }
  func.func @transform_1(%arg0: i32) -> (i32, i32) {
    %c0_i32 = arith.constant 0 : i32
    %c0_i32_0 = arith.constant 0 : i32
    %c0_i32_1 = arith.constant 0 : i32
    return %c0_i32, %c0_i32_0 : i32, i32
  }
  func.func @transform_2(%arg0: i32) -> (i32, i32) {
    %c0_i32 = arith.constant 0 : i32
    %c0_i32_0 = arith.constant 0 : i32
    %c0_i32_1 = arith.constant 0 : i32
    return %c0_i32, %c0_i32_0 : i32, i32
  }
  func.func @transform_3(%arg0: i32) -> (i32, i32) {
    %c0_i32 = arith.constant 0 : i32
    %c0_i32_0 = arith.constant 0 : i32
    %c0_i32_1 = arith.constant 0 : i32
    return %c0_i32, %c0_i32_0 : i32, i32
  }
}

</mosaic_0001>

<bundles_post_ra>
// kernel: _lambda_.13
= control target key start
LH: loop header
LB: loop body
LE: loop exit
PB: predicated region body
PF: predicated region fallthrough
CT: control target
= control target key end

     0   :  { %vm42_vm0 = vcmask 261120   ;;  %vm62_vm1 = vcmask 781312   ;;  %s124_s1 = inlined_call_operand.vmem [shape: bf16[32,96], index: 1, kind: input, shape index: {}]   ;;  %s125_s2 = inlined_call_operand.vmem [shape: f32[1,96], index: 2, kind: input, shape index: {}]   ;;  %s126_s0 = inlined_call_operand.vmem [shape: bf16[16,32], index: 0, kind: input, shape index: {}]   ;;  %s127_s3 = inlined_call_operand.vmem [shape: bf16[16,96], index: 3, kind: output, shape index: {}]  }
   0x1   :  { %v84_v0 = vld [vmem:[%s124_s1 + $0x8] sm:$0xff]  ;;  %v83_v1 = vld [vmem:[%s124_s1] sm:$0xff] }
   0x2   :  { %52 = vmatpush.bf16.msra.mxu0 %v84_v0  ;;  %v82_v2 = vld [vmem:[%s126_s0] sm:$0xff] }
   0x3   :  { %v85_v3 = vld [vmem:[%s125_s2] ss:$0 sm:$0xff] }
   0x6   :  { %53 = vmatpush.bf16.msra.mxu0 %v83_v1 }
   0x9   :  { %81 = vmatmul.msk.bf16.vlgmr.msra.gmra.mxu0 %vm42_vm0, %v82_v2 }
  0x86   :  { %v55_v4 = vpop.f32.mrf.mxu0 }
  0x87   :  { %v56_v5 = vadd.f32 %v85_v3, %v55_v4 }
  0x89   :  { %v60_v6 = vpack.c.bf16 %v56_v5, %v56_v5 }
  0x8b   :  { %63 = vst.msk [vmem:[%s127_s3] sm:$0xf] %vm62_vm1, %v60_v6 }
  0x8e   :  { %v57_v7 = vpop.f32.mrf.mxu0 }
  0x8f   :  { %v58_v8 = vadd.f32 %v85_v3, %v57_v7 }
  0x91   :  { %v61_v9 = vpack.c.bf16 %v58_v8, %v58_v8 }
  0x93   :  { %64 = vst.msk [vmem:[%s127_s3 + $0x4] sm:$0xf] %vm62_vm1, %v61_v9 }

// kernel: _lambda_.12
= control target key start
LH: loop header
LB: loop body
LE: loop exit
PB: predicated region body
PF: predicated region fallthrough
CT: control target
= control target key end

     0   :  { %vm18_vm0 = vcmask 261120   ;;  %v104_v5 = vmov 32.0   ;;  %vm84_vm6 = vcmask 257024   ;;  %s144_s0 = inlined_call_operand.vmem [shape: bf16[16,32], index: 0, kind: input, shape index: {}]   ;;  %s145_s1 = inlined_call_operand.vmem [shape: f32[1,32], index: 1, kind: input, shape index: {}]   ;;  %s146_s2 = inlined_call_operand.vmem [shape: f32[1,32], index: 2, kind: input, shape index: {}]   ;;  %s147_s3 = inlined_call_operand.vmem [shape: bf16[16,32], index: 3, kind: output, shape index: {}]  }
   0x1   :  { %v92_v0 = vld [vmem:[%s144_s0] sm:$0xff]   ;;  %98 = vrcp.f32 %v104_v5 }
   0x2   :  { %v93_v1 = vunpack.c.l.bf16 %v92_v0  ;;  %v94_v3 = vunpack.c.h.bf16 %v92_v0  ;;  %v96_v36 = vld [vmem:[%s145_s1] ss:$0 sm:$0xff] }
   0x3   :  { %v97_v39 = vld [vmem:[%s146_s2] ss:$0 sm:$0xff] }
   0x4   :  { %v19_v2 = vsel %vm18_vm0, %v93_v1, 0.0  ;;  %v22_v4 = vsel %vm18_vm0, %v94_v3, 0.0 }
   0x5   :  { %20 = vadd.xlane.f32.xlu0 %v19_v2 }
   0x7   :  { %v99_v6 = vpop.eup %98 }
   0x8   :  { %v26_v7 = vmul.f32 32.0, %v99_v6  ;;  %vm30_vm1 = vweird.f32 %v99_v6 }
   0xa   :  { %v27_v8 = vsub.f32 1.0, %v26_v7 }
   0xc   :  { %v28_v9 = vmul.f32 %v99_v6, %v27_v8 }
   0xd   :  { %23 = vadd.xlane.f32.xlu0 %v22_v4 }
   0xe   :  { %v29_v10 = vadd.f32 %v99_v6, %v28_v9 }
  0x10   :  { %v31_v11 = vsel %vm30_vm1, %v99_v6, %v29_v10 }
  0x78   :  { %v21_v12 = vpop.xlane.xlu0 %20 }
  0x79   :  { %v32_v13 = vmul.f32 %v31_v11, %v21_v12 }
  0x7b   :  { %v34_v14 = vsub.f32 %v93_v1, %v32_v13 }
  0x7d   :  { %v36_v15 = vmul.f32 %v34_v14, %v34_v14 }
  0x7f   :  { %v38_v16 = vsel %vm18_vm0, %v36_v15, 0.0 }
  0x80   :  { %39 = vadd.xlane.f32.xlu1 %v38_v16  ;;  %v24_v17 = vpop.xlane.xlu0 %23 }
  0x81   :  { %v33_v18 = vmul.f32 %v31_v11, %v24_v17 }
  0x83   :  { %v35_v19 = vsub.f32 %v94_v3, %v33_v18 }
  0x85   :  { %v37_v20 = vmul.f32 %v35_v19, %v35_v19 }
  0x87   :  { %v41_v21 = vsel %vm18_vm0, %v37_v20, 0.0 }
  0x88   :  { %42 = vadd.xlane.f32.xlu1 %v41_v21 }
  0xf3   :  { %v40_v22 = vpop.xlane.xlu1 %39 }
  0xf4   :  { %v44_v23 = vmul.f32 %v40_v22, %v31_v11 }
  0xf6   :  { %v46_v24 = vadd.f32 1e-05, %v44_v23 }
  0xf8   :  { %100 = vrsqrt.f32 %v46_v24  ;;  %vm54_vm3 = vweird.f32 %v46_v24 }
  0xfb   :  { %v43_v25 = vpop.xlane.xlu1 %42 }
  0xfc   :  { %v45_v26 = vmul.f32 %v43_v25, %v31_v11 }
  0xfe   :  { %v101_v27 = vpop.eup %100  ;;  %v47_v28 = vadd.f32 1e-05, %v45_v26 }
  0xff   :  { %v49_v29 = vmul.f32 %v101_v27, %v46_v24  ;;  %vm55_vm2 = vweird.f32 %v101_v27 }
 0x100   :  { %102 = vrsqrt.f32 %v47_v28  ;;  %vm56_vm4 = vmor %vm54_vm3, %vm55_vm2  ;;  %vm64_vm7 = vweird.f32 %v47_v28 }
 0x101   :  { %v50_v30 = vmul.f32 %v101_v27, %v49_v29 }
 0x103   :  { %v51_v31 = vmul.f32 0.5, %v50_v30 }
 0x105   :  { %v52_v32 = vsub.f32 1.5, %v51_v31 }
 0x106   :  { %v103_v33 = vpop.eup %102 }
 0x107   :  { %v53_v34 = vmul.f32 %v101_v27, %v52_v32  ;;  %v59_v35 = vmul.f32 %v103_v33, %v47_v28  ;;  %vm65_vm5 = vweird.f32 %v103_v33 }
 0x108   :  { %vm66_vm8 = vmor %vm64_vm7, %vm65_vm5 }
 0x109   :  { %v57_v37 = vsel %vm56_vm4, %v101_v27, %v53_v34  ;;  %v60_v38 = vmul.f32 %v103_v33, %v59_v35 }
 0x10a   :  { %v68_v40 = vmul.f32 %v57_v37, %v34_v14 }
 0x10b   :  { %v61_v41 = vmul.f32 0.5, %v60_v38 }
 0x10c   :  { %v74_v42 = vmul.f32 %v96_v36, %v68_v40 }
 0x10d   :  { %v62_v43 = vsub.f32 1.5, %v61_v41 }
 0x10e   :  { %v80_v44 = vadd.f32 %v97_v39, %v74_v42 }
 0x10f   :  { %v63_v45 = vmul.f32 %v103_v33, %v62_v43 }
 0x110   :  { %v82_v46 = vpack.c.bf16 %v80_v44, %v80_v44 }
 0x111   :  { %v67_v47 = vsel %vm66_vm8, %v103_v33, %v63_v45 }
 0x112   :  { %85 = vst.msk [vmem:[%s147_s3] sm:$0xf] %vm84_vm6, %v82_v46  ;;  %v69_v48 = vmul.f32 %v67_v47, %v35_v19 }
 0x114   :  { %v75_v49 = vmul.f32 %v96_v36, %v69_v48 }
 0x116   :  { %v81_v50 = vadd.f32 %v97_v39, %v75_v49 }
 0x118   :  { %v83_v51 = vpack.c.bf16 %v81_v50, %v81_v50 }
 0x11a   :  { %86 = vst.msk [vmem:[%s147_s3 + $0x4] sm:$0xf] %vm84_vm6, %v83_v51 }

// kernel: _lambda_.15
= control target key start
LH: loop header
LB: loop body
LE: loop exit
PB: predicated region body
PF: predicated region fallthrough
CT: control target
= control target key end

     0   :  { %vm51_vm0 = vcmask 261120   ;;  %v177_v15 = vmov 32.0   ;;  %vm140_vm6 = vcmask 257024   ;;  %s245_s1 = inlined_call_operand.vmem [shape: bf16[32,32], index: 1, kind: input, shape index: {}]   ;;  %s246_s2 = inlined_call_operand.vmem [shape: f32[1,32], index: 2, kind: input, shape index: {}]   ;;  %s247_s0 = inlined_call_operand.vmem [shape: bf16[16,32], index: 0, kind: input, shape index: {}]   ;;  %s248_s3 = inlined_call_operand.vmem [shape: bf16[16,32], index: 3, kind: input, shape index: {}]   ;;  %s249_s4 = inlined_call_operand.vmem [shape: f32[1,32], index: 4, kind: input, shape index: {}]   ;;  %s250_s5 = inlined_call_operand.vmem [shape: f32[1,32], index: 5, kind: input, shape index: {}]   ;;  %s251_s6 = inlined_call_operand.vmem [shape: bf16[16,32], index: 6, kind: output, shape index: {}]  }
   0x1   :  { %v162_v0 = vld [vmem:[%s245_s1 + $0x8] sm:$0xff]  ;;  %v161_v1 = vld [vmem:[%s245_s1] sm:$0xff]  ;;  %171 = vrcp.f32 %v177_v15 }
   0x2   :  { %61 = vmatpush.bf16.msra.mxu0 %v162_v0  ;;  %v160_v2 = vld [vmem:[%s247_s0] sm:$0xff] }
   0x3   :  { %v164_v3 = vld [vmem:[%s248_s3] sm:$0xff]  }
   0x4   :  { %v168_v4 = vld [vmem:[%s246_s2] ss:$0 sm:$0xff]  ;;  %v165_v5 = vunpack.c.l.bf16 %v164_v3  ;;  %v166_v10 = vunpack.c.h.bf16 %v164_v3 }
   0x5   :  { %v169_v46 = vld [vmem:[%s249_s4] ss:$0 sm:$0xff] }
   0x6   :  { %62 = vmatpush.bf16.msra.mxu0 %v161_v1  ;;  %v170_v49 = vld [vmem:[%s250_s5] ss:$0 sm:$0xff] }
   0x7   :  { %v172_v16 = vpop.eup %171 }
   0x8   :  { %v82_v17 = vmul.f32 32.0, %v172_v16  ;;  %vm86_vm1 = vweird.f32 %v172_v16 }
   0x9   :  { %159 = vmatmul.msk.bf16.vlgmr.msra.gmra.mxu0 %vm51_vm0, %v160_v2 }
   0xa   :  { %v83_v18 = vsub.f32 1.0, %v82_v17 }
   0xc   :  { %v84_v19 = vmul.f32 %v172_v16, %v83_v18 }
   0xe   :  { %v85_v20 = vadd.f32 %v172_v16, %v84_v19 }
  0x10   :  { %v87_v21 = vsel %vm86_vm1, %v172_v16, %v85_v20 }
  0x86   :  { %v64_v6 = vpop.f32.mrf.mxu0 }
  0x87   :  { %v65_v7 = vadd.f32 %v168_v4, %v64_v6 }
  0x89   :  { %v73_v8 = vadd.f32 %v165_v5, %v65_v7 }
  0x8b   :  { %v75_v9 = vsel %vm51_vm0, %v73_v8, 0.0 }
  0x8c   :  { %76 = vadd.xlane.f32.xlu0 %v75_v9 }
  0x8e   :  { %v66_v11 = vpop.f32.mrf.mxu0 }
  0x8f   :  { %v67_v12 = vadd.f32 %v168_v4, %v66_v11 }
  0x91   :  { %v74_v13 = vadd.f32 %v166_v10, %v67_v12 }
  0x93   :  { %v78_v14 = vsel %vm51_vm0, %v74_v13, 0.0 }
  0x94   :  { %79 = vadd.xlane.f32.xlu0 %v78_v14 }
  0xff   :  { %v77_v22 = vpop.xlane.xlu0 %76 }
 0x100   :  { %v88_v23 = vmul.f32 %v87_v21, %v77_v22 }
 0x102   :  { %v90_v24 = vsub.f32 %v73_v8, %v88_v23 }
 0x104   :  { %v92_v25 = vmul.f32 %v90_v24, %v90_v24 }
 0x106   :  { %v94_v26 = vsel %vm51_vm0, %v92_v25, 0.0 }
 0x107   :  { %95 = vadd.xlane.f32.xlu1 %v94_v26  ;;  %v80_v27 = vpop.xlane.xlu0 %79 }
 0x108   :  { %v89_v28 = vmul.f32 %v87_v21, %v80_v27 }
 0x10a   :  { %v91_v29 = vsub.f32 %v74_v13, %v89_v28 }
 0x10c   :  { %v93_v30 = vmul.f32 %v91_v29, %v91_v29 }
 0x10e   :  { %v97_v31 = vsel %vm51_vm0, %v93_v30, 0.0 }
 0x10f   :  { %98 = vadd.xlane.f32.xlu1 %v97_v31 }
 0x17a   :  { %v96_v32 = vpop.xlane.xlu1 %95 }
 0x17b   :  { %v100_v33 = vmul.f32 %v96_v32, %v87_v21 }
 0x17d   :  { %v102_v34 = vadd.f32 1e-05, %v100_v33 }
 0x17f   :  { %173 = vrsqrt.f32 %v102_v34  ;;  %vm110_vm3 = vweird.f32 %v102_v34 }
 0x182   :  { %v99_v35 = vpop.xlane.xlu1 %98 }
 0x183   :  { %v101_v36 = vmul.f32 %v99_v35, %v87_v21 }
 0x185   :  { %v174_v37 = vpop.eup %173  ;;  %v103_v38 = vadd.f32 1e-05, %v101_v36 }
 0x186   :  { %v105_v39 = vmul.f32 %v174_v37, %v102_v34  ;;  %vm111_vm2 = vweird.f32 %v174_v37 }
 0x187   :  { %175 = vrsqrt.f32 %v103_v38  ;;  %vm112_vm4 = vmor %vm110_vm3, %vm111_vm2  ;;  %vm120_vm7 = vweird.f32 %v103_v38 }
 0x188   :  { %v106_v40 = vmul.f32 %v174_v37, %v105_v39 }
 0x18a   :  { %v107_v41 = vmul.f32 0.5, %v106_v40 }
 0x18c   :  { %v108_v42 = vsub.f32 1.5, %v107_v41 }
 0x18d   :  { %v176_v43 = vpop.eup %175 }
 0x18e   :  { %v109_v44 = vmul.f32 %v174_v37, %v108_v42  ;;  %v115_v45 = vmul.f32 %v176_v43, %v103_v38  ;;  %vm121_vm5 = vweird.f32 %v176_v43 }
 0x18f   :  { %vm122_vm8 = vmor %vm120_vm7, %vm121_vm5 }
 0x190   :  { %v113_v47 = vsel %vm112_vm4, %v174_v37, %v109_v44  ;;  %v116_v48 = vmul.f32 %v176_v43, %v115_v45 }
 0x191   :  { %v124_v50 = vmul.f32 %v113_v47, %v90_v24 }
 0x192   :  { %v117_v51 = vmul.f32 0.5, %v116_v48 }
 0x193   :  { %v130_v52 = vmul.f32 %v169_v46, %v124_v50 }
 0x194   :  { %v118_v53 = vsub.f32 1.5, %v117_v51 }
 0x195   :  { %v136_v54 = vadd.f32 %v170_v49, %v130_v52 }
 0x196   :  { %v119_v55 = vmul.f32 %v176_v43, %v118_v53 }
 0x197   :  { %v138_v56 = vpack.c.bf16 %v136_v54, %v136_v54 }
 0x198   :  { %v123_v57 = vsel %vm122_vm8, %v176_v43, %v119_v55 }
 0x199   :  { %141 = vst.msk [vmem:[%s251_s6] sm:$0xf] %vm140_vm6, %v138_v56  ;;  %v125_v58 = vmul.f32 %v123_v57, %v91_v29 }
 0x19b   :  { %v131_v59 = vmul.f32 %v169_v46, %v125_v58 }
 0x19d   :  { %v137_v60 = vadd.f32 %v170_v49, %v131_v59 }
 0x19f   :  { %v139_v61 = vpack.c.bf16 %v137_v60, %v137_v60 }
 0x1a1   :  { %142 = vst.msk [vmem:[%s251_s6 + $0x4] sm:$0xf] %vm140_vm6, %v139_v61 }

// kernel: _lambda_.14
= control target key start
LH: loop header
LB: loop body
LE: loop exit
PB: predicated region body
PF: predicated region fallthrough
CT: control target
= control target key end

     0   :  { %s860_s15 = smov 0   ;;  %s862_s16 = smov 0   ;;  %s966_s0 = inlined_call_operand.vmem [shape: bf16[16,96], index: 0, kind: input, shape index: {}, may-alias: {0,1,2}]   ;;  %s967_s1 = inlined_call_operand.vmem [shape: bf16[16,96], index: 1, kind: input, shape index: {}, may-alias: {0,1,2}]   ;;  %s968_s2 = inlined_call_operand.vmem [shape: bf16[16,96], index: 2, kind: input, shape index: {}, may-alias: {0,1,2}]   ;;  %s969_s3 = inlined_call_operand.vmem [shape: f32[2,1,8], index: 3, kind: input, shape index: {}]   ;;  %s970_s4 = inlined_call_operand.vmem [shape: bf16[16,32], index: 4, kind: output, shape index: {}]  }
   0x1   :  { %s864_s17 = smov 0  }
   0x2 LB: > { %s40_s18 = sadd.s32 1, %s815_s16  ;;  %p727_p0 = scmp.ge.s32.totalorder %s819_s17, 1  ;;  %s819_s17 = sphi %s864_s17, %s14_s17   ;;  %s815_s16 = sphi %s862_s16, %s972_s16   ;;  %s811_s15 = sphi %s860_s15, %s971_s15  }
   0x3   : > { %p42_p1 = scmp.ge.s32.totalorder %s40_s18, 2  ;;  %p234_p2 = scmp.lt.s32.totalorder %s819_s17, 3 }
   0x5   : > { %s974_s18 = smov (%p42_p1, %s40_s18), 0  ;;  %p235_p3 = pnand %p727_p0, %p234_p2 }
   0x6   : > { %p280_p4 = scmp.lt.s32.totalorder (!%p235_p3), %s811_s15, 1  ;;  %s821_s23 = smov (!%p235_p3), 96  }
   0x7   : > { %238 = sbr.rel (%p235_p3) target bundleno = 929 (0x3a1), region = 36  ;;  %s822_s24 = smov (!%p235_p3), 88  }
   0x8   : > { %s823_s28 = smov (!%p235_p3), 120   ;;  %s824_s6 = smov (!%p235_p3), 72  }
   0x9   : > { %s825_s7 = smov (!%p235_p3), 104   ;;  %s826_s11 = smov (!%p235_p3), 64  }
   0xa   : > { %s827_s12 = smov (!%p235_p3), 80   ;;  %s828_s20 = smov (!%p235_p3), 112  }
   0xb   : > { %s830_s21 = smov (!%p235_p3), 40   ;;  %s834_s25 = smov (!%p235_p3), 16  }
   0xc   : > { %s976_s15 = smov (!%p280_p4, %s811_s15), 1  ;;  %vm325_vm0 = vcmask 64512   ;;  %vm363_vm1 = vcmask 1043456   ;;  %vm599_vm2 = vcmask 130048   ;;  %vm601_vm3 = vcmask 195584  }
   0xd   : > { %s881_s19 = sshll.u32 %s976_s15, 2  ;;  %s302_s5 = scalar_lea.vmem %s969_s3, %s976_s15  ;;  %vm604_vm4 = vcmask 257024  }
   0xe   : > { %s887_s22 = scalar_lea.vmem %s967_s1, %s881_s19  ;;  %s895_s27 = scalar_lea.vmem %s966_s0, %s881_s19  ;;  %v925_v33 = vld [vmem:[%s302_s5] ss:$0 sm:$0xff] }
   0xf   : > { %v315_v0 = vld [vmem:[%s887_s22] sm:$0xf]  ;;  %s915_s10 = scalar_lea.vmem %s968_s2, %s881_s19  ;;  %s829_s15 = smov 56  }
  0x10   : > { %v383_v1 = vld [vmem:[%s887_s22] sm:$0xf]  ;;  %v321_v2 = vunpack.c.l.b16 %v315_v0 }
  0x11   : > { %v391_v3 = vunpack.c.l.b16 %v383_v1  ;;  %v382_v6 = vld [vmem:[%s895_s27] sm:$0xf] }
  0x12   : > { %v322_v4 = vpack.c.b16 %v321_v2, %v321_v2  ;;  %v386_v7 = vunpack.c.l.b16 %v382_v6  ;;  %v519_v9 = vld [vmem:[%s887_s22] sm:$0xf] }
  0x13   : > { %v392_v5 = vpack.c.b16 %v391_v3, %v391_v3  ;;  %v527_v10 = vunpack.c.l.b16 %v519_v9  ;;  %v518_v12 = vld [vmem:[%s895_s27] sm:$0xf] }
  0x14   : > { %323 = vrot.lane.b32.xlu0 %v322_v4, %s821_s23  ;;  %v387_v8 = vpack.c.b16 %v386_v7, %v386_v7  ;;  %v522_v13 = vunpack.c.l.b16 %v518_v12  ;;  %v314_v19 = vld [vmem:[%s895_s27] sm:$0xf]  ;;  %s832_s23 = smov 8  }
  0x15   : > { %393 = vrot.lane.b32.xlu1 %v392_v5, %s822_s24  ;;  %v528_v11 = vpack.c.b16 %v527_v10, %v527_v10  ;;  %v316_v24 = vld [vmem:[%s915_s10] sm:$0xf]  ;;  %s833_s24 = smov 24  }
  0x16   : > { %v523_v14 = vpack.c.b16 %v522_v13, %v522_v13  ;;  %v356_v25 = vunpack.c.l.b16 %v316_v24  ;;  %v451_v26 = vld [vmem:[%s887_s22] sm:$0xf]  ;;  %s831_s22 = smov 48  }
  0x17   : > { %v459_v28 = vunpack.c.l.b16 %v451_v26  ;;  %v450_v30 = vld [vmem:[%s895_s27] sm:$0xf] }
  0x18   : > { %v357_v27 = vpack.c.b16 %v356_v25, %v356_v25  ;;  %v454_v31 = vunpack.c.l.b16 %v450_v30  ;;  %v384_v42 = vld [vmem:[%s915_s10] sm:$0xf] }
  0x19   : > { %v460_v29 = vpack.c.b16 %v459_v28, %v459_v28  ;;  %v425_v44 = vunpack.c.l.b16 %v384_v42  ;;  %v520_v53 = vld [vmem:[%s915_s10] sm:$0xf] }
  0x1a   : > { %358 = vrot.lane.b32.xlu2 %v357_v27, %s826_s11  ;;  %v455_v32 = vpack.c.b16 %v454_v31, %v454_v31  ;;  %v452_v54 = vld [vmem:[%s915_s10] sm:$0xf]  ;;  %v561_v55 = vunpack.c.l.b16 %v520_v53 }
  0x1b   : > { %v426_v45 = vpack.c.b16 %v425_v44, %v425_v44  ;;  %v493_v56 = vunpack.c.l.b16 %v452_v54 }
  0x1c   : > { %v562_v59 = vpack.c.b16 %v561_v55, %v561_v55 }
  0x1d   : > { %388 = vrot.lane.b32.xlu1 %v387_v8, %s823_s28  ;;  %v494_v60 = vpack.c.b16 %v493_v56, %v493_v56  ;;  %s310_s28 = scalar_lea.vmem %s970_s4, %s881_s19 }
  0x22   : > { %461 = vrot.lane.b32.xlu2 %v460_v29, %s827_s12 }
  0x25   : > { %529 = vrot.lane.b32.xlu1 %v528_v11, %s824_s6 }
  0x2a   : > { %456 = vrot.lane.b32.xlu2 %v455_v32, %s828_s20 }
  0x2d   : > { %524 = vrot.lane.b32.xlu1 %v523_v14, %s825_s7 }
  0x35   : > { %427 = vrot.lane.b32.xlu1 %v426_v45, %s829_s15 }
  0x74   : > { %v359_v41 = vpop.permute.xlu2 %358 }
  0x75   : > { %v365_v43 = vsel %vm363_vm1, %v359_v41, 0 }
  0x76   : > { %374 = vmatpush.bf16.msra.mxu1 %v365_v43 }
  0x7c   : > { %v462_v50 = vpop.permute.xlu2 %461 }
  0x7d   : > { %v467_v51 = vsel %vm325_vm0, %v462_v50, 0 }
  0x7e   : > { %476 = vmatpush.bf16.xpose.msrb.mxu1 %v467_v51 }
  0x84   : > { %v457_v0 = vpop.permute.xlu2 %456 }
  0x86   : > { %v324_v15 = vpop.permute.xlu0 %323 }
  0x87   : > { %v394_v16 = vpop.permute.xlu1 %393  ;;  %v330_v17 = vsel %vm325_vm0, %v324_v15, 0 }
  0x88   : > { %v399_v18 = vsel %vm325_vm0, %v394_v16, 0  ;;  %339 = vmatpush.bf16.xpose.msra.mxu0 %v330_v17 }
  0x89   : > { %408 = vmatpush.bf16.xpose.msra.mxu2 %v399_v18 }
  0x8f   : > { %732 = vmatmul.msk.bf16.vlgmr.msra.gmra.mxu0 %vm325_vm0, %v314_v19  ;;  %v389_v20 = vpop.permute.xlu1 %388 }
  0x90   : > { %734 = vmatmul.msk.bf16.vlgmr.msra.gmra.mxu2 %vm325_vm0, %v389_v20 }
  0x97   : > { %v530_v21 = vpop.permute.xlu1 %529 }
  0x98   : > { %v535_v22 = vsel %vm325_vm0, %v530_v21, 0 }
  0x99   : > { %544 = vmatpush.bf16.xpose.msrb.mxu0 %v535_v22 }
  0x9f   : > { %v525_v23 = vpop.permute.xlu1 %524 }
  0xa0   : > { %738 = vmatmul.msk.bf16.vlgmr.msrb.gmra.mxu0 %vm325_vm0, %v525_v23 }
  0xa7   : > { %v428_v4 = vpop.permute.xlu1 %427 }
  0xa8   : > { %v433_v5 = vsel %vm363_vm1, %v428_v4, 0 }
  0xa9   : > { %442 = vmatpush.bf16.msra.mxu3 %v433_v5 }
 0x10c   : > { %v341_v34 = vpop.f32.mrf.mxu0 }
 0x10d   : > { %v342_v35 = vadd.f32 %v925_v33, %v341_v34 }
 0x10f   : > { %v345_v36 = vsel %vm325_vm0, %v342_v35, -inf }
 0x110   : > { %346 = vmax.xlane.f32.xlu0 %v345_v36 }
 0x113   : > { %v410_v38 = vpop.f32.mrf.mxu2 }
 0x114   : > { %v343_v37 = vpop.f32.mrf.mxu0  ;;  %v411_v39 = vadd.f32 %v925_v33, %v410_v38 }
 0x116   : > { %v414_v40 = vsel %vm325_vm0, %v411_v39, -inf }
 0x117   : > { %415 = vmax.xlane.f32.xlu2 %v414_v40 }
 0x11b   : > { %v412_v46 = vpop.f32.mrf.mxu2 }
 0x11d   : > { %v546_v47 = vpop.f32.mrf.mxu0 }
 0x11e   : > { %v547_v48 = vadd.f32 %v925_v33, %v546_v47 }
 0x120   : > { %v550_v49 = vsel %vm325_vm0, %v547_v48, -inf }
 0x121   : > { %551 = vmax.xlane.f32.xlu0 %v550_v49 }
 0x125   : > { %v548_v52 = vpop.f32.mrf.mxu0 }
 0x12f   : > { %563 = vrot.lane.b32.xlu2 %v562_v59, %s830_s21 }
 0x135   : > { %495 = vrot.lane.b32.xlu0 %v494_v60, %s831_s22 }
 0x183   : > { %v347_v57 = vpop.xlane.xlu0 %346 }
 0x184   : > { %v348_v58 = vsub.f32 %v342_v35, %v347_v57 }
 0x186   : > { %v349_v61 = vmul.f32 1.442695, %v348_v58 }
 0x188   : > { %781 = vpow2.f32 %v349_v61 }
 0x18a   : > { %v416_v1 = vpop.xlane.xlu2 %415 }
 0x18b   : > { %v417_v2 = vsub.f32 %v411_v39, %v416_v1 }
 0x18d   : > { %v418_v3 = vmul.f32 1.442695, %v417_v2 }
 0x18e   : > { %v782_v62 = vpop.eup %781 }
 0x18f   : > { %v354_v63 = vpack.c.bf16 %v782_v62, %v782_v62  ;;  %783 = vpow2.f32 %v418_v3  ;;  %v351_v23 = vsel %vm325_vm0, %v782_v62, 0.0 }
 0x191   : > { %733 = vmatmul.msk.bf16.vlgmr.msra.gmra.mxu1 %vm325_vm0, %v354_v63 }
 0x192   : > { %v564_v6 = vpop.permute.xlu2 %563 }
 0x193   : > { %v569_v7 = vsel %vm363_vm1, %v564_v6, 0 }
 0x194   : > { %v552_v8 = vpop.xlane.xlu0 %551  ;;  %578 = vmatpush.bf16.msrb.mxu2 %v569_v7 }
 0x195   : > { %v784_v9 = vpop.eup %783  ;;  %v553_v10 = vsub.f32 %v547_v48, %v552_v8 }
 0x196   : > { %v423_v11 = vpack.c.bf16 %v784_v9, %v784_v9  ;;  %v420_v12 = vsel %vm325_vm0, %v784_v9, 0.0 }
 0x197   : > { %v554_v13 = vmul.f32 1.442695, %v553_v10  ;;  %421 = vadd.xlane.f32.xlu0 %v420_v12 }
 0x198   : > { %735 = vmatmul.msk.bf16.vlgmr.msra.gmra.mxu3 %vm325_vm0, %v423_v11 }
 0x199   : > { %785 = vpow2.f32 %v554_v13 }
 0x19f   : > { %v786_v14 = vpop.eup %785 }
 0x1a0   : > { %v559_v15 = vpack.c.bf16 %v786_v14, %v786_v14  ;;  %v556_v16 = vsel %vm325_vm0, %v786_v14, 0.0 }
 0x1a1   : > { %736 = vmatmul.msk.bf16.vlgmr.msrb.gmra.mxu1 %vm325_vm0, %v457_v0  ;;  %557 = vadd.xlane.f32.xlu2 %v556_v16 }
 0x1a2   : > { %739 = vmatmul.msk.bf16.vlgmr.msrb.gmra.mxu2 %vm325_vm0, %v559_v15 }
 0x1a7   : > { %v496_v24 = vpop.permute.xlu0 %495 }
 0x1a8   : > { %v501_v25 = vsel %vm363_vm1, %v496_v24, 0 }
 0x1a9   : > { %510 = vmatpush.bf16.msrb.mxu3 %v501_v25 }
 0x20a   : > { %v422_v36 = vpop.xlane.xlu0 %421 }
 0x20e   : > { %v376_v17 = vpop.f32.mrf.mxu1 }
 0x214   : > { %v558_v37 = vpop.xlane.xlu2 %557 }
 0x216   : > { %v378_v18 = vpop.f32.mrf.mxu1 }
 0x21b   : > { %v444_v26 = vpop.f32.mrf.mxu3 }
 0x21e   : > { %v478_v19 = vpop.f32.mrf.mxu1 }
 0x21f   : > { %v479_v20 = vadd.f32 %v925_v33, %v478_v19 }
 0x221   : > { %v482_v21 = vsel %vm325_vm0, %v479_v20, -inf }
 0x222   : > { %483 = vmax.xlane.f32.xlu1 %v482_v21 }
 0x223   : > { %v446_v27 = vpop.f32.mrf.mxu3 }
 0x225   : > { %v580_v28 = vpop.f32.mrf.mxu2 }
 0x226   : > { %v480_v22 = vpop.f32.mrf.mxu1 }
 0x22a   : > { %352 = vadd.xlane.f32.xlu1 %v351_v23 }
 0x22d   : > { %v582_v29 = vpop.f32.mrf.mxu2 }
 0x295   : > { %v484_v30 = vpop.xlane.xlu1 %483 }
 0x296   : > { %v485_v31 = vsub.f32 %v479_v20, %v484_v30 }
 0x298   : > { %v486_v32 = vmul.f32 1.442695, %v485_v31 }
 0x29a   : > { %787 = vpow2.f32 %v486_v32 }
 0x29b   : > { %789 = vrcp.f32 %v422_v36 }
 0x29c   : > { %791 = vrcp.f32 %v558_v37 }
 0x29d   : > { %v353_v42 = vpop.xlane.xlu1 %352 }
 0x2a0   : > { %v788_v33 = vpop.eup %787 }
 0x2a1   : > { %v488_v34 = vsel %vm325_vm0, %v788_v33, 0.0  ;;  %v491_v35 = vpack.c.bf16 %v788_v33, %v788_v33  ;;  %v790_v38 = vpop.eup %789 }
 0x2a2   : > { %489 = vadd.xlane.f32.xlu1 %v488_v34  ;;  %v449_v39 = vmul.f32 %v790_v38, %v444_v26  ;;  %v792_v40 = vpop.eup %791 }
 0x2a3   : > { %737 = vmatmul.msk.bf16.vlgmr.msrb.gmra.mxu3 %vm325_vm0, %v491_v35  ;;  %v585_v41 = vmul.f32 %v792_v40, %v580_v28 }
 0x2bb   : > { %587 = vrot.lane.b32.xlu1 %v449_v39, %s832_s23 }
 0x2c3   : > { %595 = vrot.lane.b32.xlu1 %v585_v41, %s833_s24 }
 0x315   : > { %v490_v43 = vpop.xlane.xlu1 %489 }
 0x316   : > { %793 = vrcp.f32 %v490_v43 }
 0x317   : > { %795 = vrcp.f32 %v353_v42 }
 0x31c   : > { %v794_v44 = vpop.eup %793 }
 0x31d   : > { %v796_v49 = vpop.eup %795 }
 0x31e   : > { %v381_v50 = vmul.f32 %v796_v49, %v376_v17 }
 0x326   : > { %v512_v45 = vpop.f32.mrf.mxu3 }
 0x327   : > { %v517_v46 = vmul.f32 %v794_v44, %v512_v45 }
 0x329   : > { %591 = vrot.lane.b32.xlu0 %v517_v46, %s834_s25 }
 0x32d   : > { %v588_v48 = vpop.permute.xlu1 %587 }
 0x32e   : > { %v514_v47 = vpop.f32.mrf.mxu3  ;;  %v598_v51 = vsel %vm325_vm0, %v381_v50, %v588_v48 }
 0x335   : > { %v596_v53 = vpop.permute.xlu1 %595 }
 0x39b   : > { %v592_v52 = vpop.permute.xlu0 %591 }
 0x39c   : > { %v600_v54 = vsel %vm599_vm2, %v598_v51, %v592_v52 }
 0x39d   : > { %v602_v55 = vsel %vm601_vm3, %v600_v54, %v596_v53 }
 0x39e   : > { %v603_v56 = vpack.c.bf16 %v602_v55, %v602_v55 }
 0x3a0   : > { %605 = vst.msk [vmem:[%s310_s28] sm:$0xf] %vm604_vm4, %v603_v56 }
 0x3a1 PF: > { %s14_s17 = sadd.s32 1, %s819_s17   ;;  %s971_s15 = smov %s815_s16 }
 0x3a2   : > { %p11_p5 = scmp.ge.s32.totalorder %s14_s17, 4   ;;  %s972_s16 = smov %s974_s18 }
 0x3a4   :  { %13 = sbr.rel (!%p11_p5) target bundleno = 2 (0x2), region = 75 }

// kernel: _lambda_.16
= control target key start
LH: loop header
LB: loop body
LE: loop exit
PB: predicated region body
PF: predicated region fallthrough
CT: control target
= control target key end

     0   :  { %vm42_vm0 = vcmask 261120   ;;  %vm80_vm1 = vcmask 519168   ;;  %s146_s1 = inlined_call_operand.vmem [shape: bf16[32,64], index: 1, kind: input, shape index: {}]   ;;  %s147_s2 = inlined_call_operand.vmem [shape: f32[1,64], index: 2, kind: input, shape index: {}]   ;;  %s148_s0 = inlined_call_operand.vmem [shape: bf16[16,32], index: 0, kind: input, shape index: {}]   ;;  %s149_s3 = inlined_call_operand.vmem [shape: bf16[16,64], index: 3, kind: output, shape index: {}]  }
   0x1   :  { %v102_v0 = vld [vmem:[%s146_s1 + $0x8] sm:$0xff]  ;;  %v101_v1 = vld [vmem:[%s146_s1] sm:$0xff] }
   0x2   :  { %52 = vmatpush.bf16.msra.mxu0 %v102_v0  ;;  %v100_v2 = vld [vmem:[%s148_s0] sm:$0xff] }
   0x3   :  { %v103_v3 = vld [vmem:[%s147_s2] ss:$0 sm:$0xff] }
   0x6   :  { %53 = vmatpush.bf16.msra.mxu0 %v101_v1 }
   0x9   :  { %99 = vmatmul.msk.bf16.vlgmr.msra.gmra.mxu0 %vm42_vm0, %v100_v2 }
  0x86   :  { %v55_v4 = vpop.f32.mrf.mxu0 }
  0x87   :  { %v56_v5 = vadd.f32 %v103_v3, %v55_v4 }
  0x89   :  { %v60_v6 = vmul.f32 %v56_v5, %v56_v5 }
  0x8b   :  { %v62_v7 = vmul.f32 %v60_v6, %v56_v5 }
  0x8d   :  { %v64_v8 = vmul.f32 0.044715, %v62_v7 }
  0x8e   :  { %v57_v9 = vpop.f32.mrf.mxu0 }
  0x8f   :  { %v66_v10 = vadd.f32 %v64_v8, %v56_v5  ;;  %v58_v11 = vadd.f32 %v103_v3, %v57_v9 }
  0x91   :  { %v68_v12 = vmul.f32 0.7978846, %v66_v10  ;;  %v61_v13 = vmul.f32 %v58_v11, %v58_v11 }
  0x93   :  { %104 = vtanh.f32 %v68_v12  ;;  %v63_v14 = vmul.f32 %v61_v13, %v58_v11 }
  0x95   :  { %v65_v15 = vmul.f32 0.044715, %v63_v14 }
  0x97   :  { %v67_v16 = vadd.f32 %v65_v15, %v58_v11 }
  0x99   :  { %v105_v17 = vpop.eup %104  ;;  %v69_v18 = vmul.f32 0.7978846, %v67_v16 }
  0x9a   :  { %v72_v19 = vadd.f32 1.0, %v105_v17 }
  0x9b   :  { %106 = vtanh.f32 %v69_v18 }
  0x9c   :  { %v74_v20 = vmul.f32 0.5, %v72_v19 }
  0x9e   :  { %v76_v21 = vmul.f32 %v74_v20, %v56_v5 }
  0xa0   :  { %v78_v22 = vpack.c.bf16 %v76_v21, %v76_v21 }
  0xa1   :  { %v107_v23 = vpop.eup %106 }
  0xa2   :  { %81 = vst.msk [vmem:[%s149_s3] sm:$0xf] %vm80_vm1, %v78_v22  ;;  %v73_v24 = vadd.f32 1.0, %v107_v23 }
  0xa4   :  { %v75_v25 = vmul.f32 0.5, %v73_v24 }
  0xa6   :  { %v77_v26 = vmul.f32 %v75_v25, %v58_v11 }
  0xa8   :  { %v79_v27 = vpack.c.bf16 %v77_v26, %v77_v26 }
  0xaa   :  { %82 = vst.msk [vmem:[%s149_s3 + $0x4] sm:$0xf] %vm80_vm1, %v79_v27 }

// kernel: _lambda_.17
= control target key start
LH: loop header
LB: loop body
LE: loop exit
PB: predicated region body
PF: predicated region fallthrough
CT: control target
= control target key end

     0   :  { %vm67_vm0 = vcmask 523264   ;;  %vm91_vm1 = vcmask 261120   ;;  %v204_v17 = vmov 32.0   ;;  %vm157_vm7 = vcmask 257024   ;;  %s277_s1 = inlined_call_operand.vmem [shape: bf16[64,32], index: 1, kind: input, shape index: {}]   ;;  %s278_s2 = inlined_call_operand.vmem [shape: f32[1,32], index: 2, kind: input, shape index: {}]   ;;  %s279_s0 = inlined_call_operand.vmem [shape: bf16[16,64], index: 0, kind: input, shape index: {}]   ;;  %s280_s3 = inlined_call_operand.vmem [shape: bf16[16,32], index: 3, kind: input, shape index: {}]   ;;  %s281_s4 = inlined_call_operand.vmem [shape: f32[1,32], index: 4, kind: input, shape index: {}]   ;;  %s282_s5 = inlined_call_operand.vmem [shape: f32[1,32], index: 5, kind: input, shape index: {}]   ;;  %s283_s6 = inlined_call_operand.vmem [shape: bf16[16,32], index: 6, kind: output, shape index: {}]  }
   0x1   :  { %v189_v0 = vld [vmem:[%s277_s1 + $0x18] sm:$0xff]  ;;  %v188_v1 = vld [vmem:[%s277_s1 + $0x10] sm:$0xff]  ;;  %v187_v2 = vld [vmem:[%s277_s1 + $0x8] sm:$0xff]  ;;  %198 = vrcp.f32 %v204_v17 }
   0x2   :  { %75 = vmatpush.bf16.msra.mxu0 %v189_v0  ;;  %v186_v3 = vld [vmem:[%s277_s1] sm:$0xff] }
   0x3   :  { %v185_v4 = vld [vmem:[%s279_s0] sm:$0xff] }
   0x4   :  { %v191_v5 = vld [vmem:[%s280_s3] sm:$0xff]  }
   0x5   :  { %v195_v6 = vld [vmem:[%s278_s2] ss:$0 sm:$0xff]  ;;  %v192_v7 = vunpack.c.l.bf16 %v191_v5  ;;  %v193_v12 = vunpack.c.h.bf16 %v191_v5 }
   0x6   :  { %76 = vmatpush.bf16.msra.mxu0 %v188_v1  ;;  %v196_v48 = vld [vmem:[%s281_s4] ss:$0 sm:$0xff] }
   0x7   :  { %v199_v18 = vpop.eup %198  ;;  %v197_v51 = vld [vmem:[%s282_s5] ss:$0 sm:$0xff] }
   0x8   :  { %v99_v19 = vmul.f32 32.0, %v199_v18  ;;  %vm103_vm2 = vweird.f32 %v199_v18 }
   0xa   :  { %77 = vmatpush.bf16.msra.mxu0 %v187_v2  ;;  %v100_v20 = vsub.f32 1.0, %v99_v19 }
   0xc   :  { %v101_v21 = vmul.f32 %v199_v18, %v100_v20 }
   0xe   :  { %78 = vmatpush.bf16.msra.mxu0 %v186_v3  ;;  %v102_v22 = vadd.f32 %v199_v18, %v101_v21 }
  0x10   :  { %v104_v23 = vsel %vm103_vm2, %v199_v18, %v102_v22 }
  0x11   :  { %184 = vmatmul.msk.bf16.vlgmr.msra.gmra.mxu0 %vm67_vm0, %v185_v4 }
  0x8e   :  { %v80_v8 = vpop.f32.mrf.mxu0 }
  0x8f   :  { %v81_v9 = vadd.f32 %v195_v6, %v80_v8 }
  0x91   :  { %v89_v10 = vadd.f32 %v192_v7, %v81_v9 }
  0x93   :  { %v92_v11 = vsel %vm91_vm1, %v89_v10, 0.0 }
  0x94   :  { %93 = vadd.xlane.f32.xlu0 %v92_v11 }
  0x96   :  { %v82_v13 = vpop.f32.mrf.mxu0 }
  0x97   :  { %v83_v14 = vadd.f32 %v195_v6, %v82_v13 }
  0x99   :  { %v90_v15 = vadd.f32 %v193_v12, %v83_v14 }
  0x9b   :  { %v95_v16 = vsel %vm91_vm1, %v90_v15, 0.0 }
  0x9c   :  { %96 = vadd.xlane.f32.xlu0 %v95_v16 }
 0x107   :  { %v94_v24 = vpop.xlane.xlu0 %93 }
 0x108   :  { %v105_v25 = vmul.f32 %v104_v23, %v94_v24 }
 0x10a   :  { %v107_v26 = vsub.f32 %v89_v10, %v105_v25 }
 0x10c   :  { %v109_v27 = vmul.f32 %v107_v26, %v107_v26 }
 0x10e   :  { %v111_v28 = vsel %vm91_vm1, %v109_v27, 0.0 }
 0x10f   :  { %112 = vadd.xlane.f32.xlu1 %v111_v28  ;;  %v97_v29 = vpop.xlane.xlu0 %96 }
 0x110   :  { %v106_v30 = vmul.f32 %v104_v23, %v97_v29 }
 0x112   :  { %v108_v31 = vsub.f32 %v90_v15, %v106_v30 }
 0x114   :  { %v110_v32 = vmul.f32 %v108_v31, %v108_v31 }
 0x116   :  { %v114_v33 = vsel %vm91_vm1, %v110_v32, 0.0 }
 0x117   :  { %115 = vadd.xlane.f32.xlu1 %v114_v33 }
 0x182   :  { %v113_v34 = vpop.xlane.xlu1 %112 }
 0x183   :  { %v117_v35 = vmul.f32 %v113_v34, %v104_v23 }
 0x185   :  { %v119_v36 = vadd.f32 1e-05, %v117_v35 }
 0x187   :  { %200 = vrsqrt.f32 %v119_v36  ;;  %vm127_vm4 = vweird.f32 %v119_v36 }
 0x18a   :  { %v116_v37 = vpop.xlane.xlu1 %115 }
 0x18b   :  { %v118_v38 = vmul.f32 %v116_v37, %v104_v23 }
 0x18d   :  { %v201_v39 = vpop.eup %200  ;;  %v120_v40 = vadd.f32 1e-05, %v118_v38 }
 0x18e   :  { %v122_v41 = vmul.f32 %v201_v39, %v119_v36  ;;  %vm128_vm3 = vweird.f32 %v201_v39 }
 0x18f   :  { %202 = vrsqrt.f32 %v120_v40  ;;  %vm129_vm5 = vmor %vm127_vm4, %vm128_vm3  ;;  %vm137_vm8 = vweird.f32 %v120_v40 }
 0x190   :  { %v123_v42 = vmul.f32 %v201_v39, %v122_v41 }
 0x192   :  { %v124_v43 = vmul.f32 0.5, %v123_v42 }
 0x194   :  { %v125_v44 = vsub.f32 1.5, %v124_v43 }
 0x195   :  { %v203_v45 = vpop.eup %202 }
 0x196   :  { %v126_v46 = vmul.f32 %v201_v39, %v125_v44  ;;  %v132_v47 = vmul.f32 %v203_v45, %v120_v40  ;;  %vm138_vm6 = vweird.f32 %v203_v45 }
 0x197   :  { %vm139_vm9 = vmor %vm137_vm8, %vm138_vm6 }
 0x198   :  { %v130_v49 = vsel %vm129_vm5, %v201_v39, %v126_v46  ;;  %v133_v50 = vmul.f32 %v203_v45, %v132_v47 }
 0x199   :  { %v141_v52 = vmul.f32 %v130_v49, %v107_v26 }
 0x19a   :  { %v134_v53 = vmul.f32 0.5, %v133_v50 }
 0x19b   :  { %v147_v54 = vmul.f32 %v196_v48, %v141_v52 }
 0x19c   :  { %v135_v55 = vsub.f32 1.5, %v134_v53 }
 0x19d   :  { %v153_v56 = vadd.f32 %v197_v51, %v147_v54 }
 0x19e   :  { %v136_v57 = vmul.f32 %v203_v45, %v135_v55 }
 0x19f   :  { %v155_v58 = vpack.c.bf16 %v153_v56, %v153_v56 }
 0x1a0   :  { %v140_v59 = vsel %vm139_vm9, %v203_v45, %v136_v57 }
 0x1a1   :  { %158 = vst.msk [vmem:[%s283_s6] sm:$0xf] %vm157_vm7, %v155_v58  ;;  %v142_v60 = vmul.f32 %v140_v59, %v108_v31 }
 0x1a3   :  { %v148_v61 = vmul.f32 %v196_v48, %v142_v60 }
 0x1a5   :  { %v154_v62 = vadd.f32 %v197_v51, %v148_v61 }
 0x1a7   :  { %v156_v63 = vpack.c.bf16 %v154_v62, %v154_v62 }
 0x1a9   :  { %159 = vst.msk [vmem:[%s283_s6 + $0x4] sm:$0xf] %vm157_vm7, %v156_v63 }

// kernel: _lambda_.23
= control target key start
LH: loop header
LB: loop body
LE: loop exit
PB: predicated region body
PF: predicated region fallthrough
CT: control target
= control target key end

     0   :  { %vm22_vm0 = vcmask 254976   ;;  %vm50_vm4 = vcmask 1024   ;;  %s95_s0 = inlined_call_operand.vmem [shape: f32[2,32], index: 0, kind: input, shape index: {}]   ;;  %s96_s1 = inlined_call_operand.vmem [shape: f32[1,32], index: 1, kind: input, shape index: {}]   ;;  %s97_s2 = inlined_call_operand.<no memory space> [shape: f32[1,1], index: 2, kind: input, shape index: {}]   ;;  %s98_s3 = inlined_call_operand.vmem [shape: f32[2,1], index: 3, kind: output, shape index: {}]  }
   0x1   :  { %v16_v0 = vld [vmem:[%s95_s0] sm:$0x3]  ;;  %v8_v2 = vstv %s97_s2 }
   0x2   :  { %v57_v1 = vld [vmem:[%s96_s1] ss:$0 sm:$0xff]  ;;  %9 = vst [vmem:[#allocation2] sm:$0x1] %v8_v2 }
   0x3   :  { %v21_v3 = vmul.f32 %v57_v1, %v16_v0 }
   0x5   :  { %v23_v4 = vsel %vm22_vm0, %v21_v3, 0.0 }
   0x6   :  { %24 = vadd.xlane.f32.xlu0 %v23_v4 }
   0x9   :  { %v58_v5 = vld [vmem:[#allocation2] ss:$0 sm:$0xff] }
  0x79   :  { %v25_v6 = vpop.xlane.xlu0 %24 }
  0x7a   :  { %v30_v7 = vadd.f32 %v58_v5, %v25_v6 }
  0x7c   :  { %v56_v8 = vmul.f32 -1.442695, %v30_v7 }
  0x7e   :  { %59 = vpow2.f32 %v56_v8 }
  0x84   :  { %v60_v9 = vpop.eup %59 }
  0x85   :  { %v34_v10 = vadd.f32 1.0, %v60_v9 }
  0x87   :  { %61 = vrcp.f32 %v34_v10  ;;  %v46_v14 = vand.u32 2147483648, %v34_v10  ;;  %v44_v16 = vand.u32 2147483647, %v34_v10  ;;  %vm40_vm2 = vweird.f32 %v34_v10 }
  0x89   :  { %v47_v18 = vor.u32 1.1754944e-38, %v46_v14  ;;  %vm45_vm5 = vcmp.eq.f32.partialorder %v44_v16, 8.507059e+37 }
  0x8d   :  { %v62_v11 = vpop.eup %61 }
  0x8e   :  { %v36_v12 = vmul.f32 %v62_v11, %v34_v10  ;;  %vm41_vm1 = vweird.f32 %v62_v11 }
  0x8f   :  { %vm42_vm3 = vmor %vm40_vm2, %vm41_vm1 }
  0x90   :  { %v37_v13 = vsub.f32 1.0, %v36_v12 }
  0x92   :  { %v38_v15 = vmul.f32 %v62_v11, %v37_v13 }
  0x94   :  { %v39_v17 = vadd.f32 %v62_v11, %v38_v15 }
  0x96   :  { %v43_v19 = vsel %vm42_vm3, %v62_v11, %v39_v17 }
  0x97   :  { %v48_v20 = vsel %vm45_vm5, %v47_v18, %v43_v19 }
  0x98   :  { %51 = vst.msk [vmem:[%s98_s3] sm:$0x3] %vm50_vm4, %v48_v20 }

</bundles_post_ra>
